<compile_context>
chip_gen: v7x
topology: tpu7x:2x2x1
jax: 0.10.0
libtpu: 0.0.40
codegen_flags: <defaults>
</compile_context>

<pallas_src>
import jax
import jax.numpy as jnp
from jax.experimental import pallas as pl
from jax.experimental.pallas import tpu as pltpu


CHUNK_H = 8  # conv/ReLU/GAP processed in H-chunks of this many output rows


# ---------------------------------------------------------------------------
# Kernel 1: fused conv3x3 + ReLU + global-average-pool (one image per grid step)
# ---------------------------------------------------------------------------

def _cnn_gap_kernel(x_ref, w_ref, b_ref, feat_ref):
    # x_ref:    (1, H+2, W+2, C_in)  padded NHWC image block (one batch element)
    # w_ref:    (9, C_in, C_feat)    conv weight (bf16), resident across grid steps
    # b_ref:    (1, C_feat)          conv bias (f32), resident
    # feat_ref: (1, 1, C_feat)       pooled feature row for this batch element
    x = x_ref[0]                                    # (H+2, W+2, C_in), f32
    hp2, wp2, cin = x.shape
    h, w = hp2 - 2, wp2 - 2
    cf = w_ref.shape[-1]

    gap = jnp.zeros((1, cf), jnp.float32)
    n_chunks = h // CHUNK_H
    for ci in range(n_chunks):                      # static unroll; bounds VMEM use
        h0 = ci * CHUNK_H
        acc = jnp.zeros((CHUNK_H * w, cf), jnp.float32)
        # 3x3 conv as 9 shifted matmuls with K = C_in (no im2col materialization).
        for di in range(3):
            for dj in range(3):
                xs = x[h0 + di:h0 + di + CHUNK_H, dj:dj + w, :]
                xs = xs.reshape(CHUNK_H * w, cin).astype(jnp.bfloat16)
                acc = acc + jnp.dot(xs, w_ref[di * 3 + dj],
                                    preferred_element_type=jnp.float32)
        act = jnp.maximum(acc + b_ref[...], 0.0)    # bias + ReLU
        gap = gap + jnp.sum(act, axis=0, keepdims=True)
    feat_ref[0] = gap * (1.0 / (h * w))             # adaptive average pool


def cnn_gap(x_pad_nhwc, wc, bc):
    b, hp2, wp2, cin = x_pad_nhwc.shape
    cf = wc.shape[-1]
    assert (hp2 - 2) % CHUNK_H == 0, "H must be a multiple of CHUNK_H"
    return pl.pallas_call(
        _cnn_gap_kernel,
        out_shape=jax.ShapeDtypeStruct((b, 1, cf), jnp.float32),
        grid=(b,),
        in_specs=[
            pl.BlockSpec((1, hp2, wp2, cin), lambda i: (i, 0, 0, 0)),
            pl.BlockSpec((9, cin, cf), lambda i: (0, 0, 0)),   # resident weights
            pl.BlockSpec((1, cf), lambda i: (0, 0)),           # resident bias
        ],
        out_specs=pl.BlockSpec((1, 1, cf), lambda i: (i, 0, 0)),
        compiler_params=pltpu.CompilerParams(
            dimension_semantics=("parallel",),          # v7x dual-TC sharding
            vmem_limit_bytes=32 * 1024 * 1024,
        ),
    )(x_pad_nhwc, wc, bc)


# ---------------------------------------------------------------------------
# Kernel 2: classifier (fc0 -> ReLU -> fc_age) + DEX head
# ---------------------------------------------------------------------------

def _cls_dex_kernel(feat_ref, w0_ref, b0_ref, wa_ref, ba_ref, ages_ref,
                    age_ref, fc_ref):
    feat = feat_ref[...]                                               # (B, C_feat) f32
    h = jnp.dot(feat.astype(jnp.bfloat16), w0_ref[...],
                preferred_element_type=jnp.float32)
    h = jnp.maximum(h + b0_ref[...], 0.0)
    # TODO(synk): nn.Dropout between fc layers is inference-mode identity here.
    logits = jnp.dot(h.astype(jnp.bfloat16), wa_ref[...],
                     preferred_element_type=jnp.float32) + ba_ref[...]

    # DEX head: softmax, expected age, log-softmax (stable: (z) - log(sum)).
    m = jnp.max(logits, axis=-1, keepdims=True)
    z = logits - m
    e = jnp.exp(z)
    s = jnp.sum(e, axis=-1, keepdims=True)
    p = e * pl.reciprocal(s, approx=True)                              # EUP recip
    age_ref[...] = jnp.sum(p * ages_ref[...], axis=-1, keepdims=True)  # VPU+XLU
    fc_ref[...] = z - jnp.log(s)                                       # log-softmax


def cls_dex(feat, w0, b0, wa, ba, ages):
    b, f = feat.shape
    hid = w0.shape[1]
    n_age = wa.shape[1]
    return pl.pallas_call(
        _cls_dex_kernel,
        out_shape=(
            jax.ShapeDtypeStruct((b, 1), jnp.float32),      # age_out (before view(-1))
            jax.ShapeDtypeStruct((b, n_age), jnp.float32),  # fc_out = log(softmax)
        ),
        grid=(1,),
        in_specs=[
            pl.BlockSpec((b, f), lambda i: (0, 0)),
            pl.BlockSpec((f, hid), lambda i: (0, 0)),
            pl.BlockSpec((1, hid), lambda i: (0, 0)),
            pl.BlockSpec((hid, n_age), lambda i: (0, 0)),
            pl.BlockSpec((1, n_age), lambda i: (0, 0)),
            pl.BlockSpec((1, n_age), lambda i: (0, 0)),
        ],
        out_specs=(
            pl.BlockSpec((b, 1), lambda i: (0, 0)),
            pl.BlockSpec((b, n_age), lambda i: (0, 0)),
        ),
    )(feat, w0, b0, wa, ba, ages)


# ---------------------------------------------------------------------------
# Forward (glue ops only: pad + NCHW->NHWC transpose + reshapes)
# ---------------------------------------------------------------------------

def age_model_forward(img_nchw, params):
    """Mirrors AgeModel.forward for opts.cls_type == 'dex'.

    params['ages'] must be the (1, max_age - min_age + 1) row of ages
    spanning [min_age, max_age] (same values the PyTorch module builds).
    Returns (age_out: (B,), fc_out: (B, n_age) = log-softmax of fc_age logits).
    """
    b = img_nchw.shape[0]
    xp = jnp.pad(img_nchw, ((0, 0), (0, 0), (1, 1), (1, 1)))      # pad=1
    x_nhwc = jnp.transpose(xp, (0, 2, 3, 1))                      # (B, H+2, W+2, C)
    feat = cnn_gap(x_nhwc, params["wc"], params["bc"])            # (B, 1, C_feat)
    feat = feat.reshape(b, -1)                                    # feat.view(B, -1)
    age2d, fc_out = cls_dex(feat, params["w0"], params["b0"],
                            params["wa"], params["ba"], params["ages"])
    return age2d.reshape(-1), fc_out                              # .view(-1)


# ---------------------------------------------------------------------------
# Deterministic parameter init (xavier-normal weights, zero biases, per _init_weight)
# ---------------------------------------------------------------------------

def init_params(key, c_in, c_feat, fc_size, n_age):
    k1, k2, k3 = jax.random.split(key, 3)

    def xavier(k, shape, fan_in, fan_out):
        std = jnp.sqrt(2.0 / (fan_in + fan_out))
        return std * jax.random.normal(k, shape, dtype=jnp.float32)

    return {
        # conv weight laid out (3*3, C_in, C_feat): index [di*3+dj, cin, cout]
        "wc": xavier(k1, (9, c_in, c_feat), c_in * 9, c_feat).astype(jnp.bfloat16),
        "bc": jnp.zeros((1, c_feat), jnp.float32),
        "w0": xavier(k2, (c_feat, fc_size), c_feat, fc_size).astype(jnp.bfloat16),
        "b0": jnp.zeros((1, fc_size), jnp.float32),
        "wa": xavier(k3, (fc_size, n_age), fc_size, n_age).astype(jnp.bfloat16),
        "ba": jnp.zeros((1, n_age), jnp.float32),
    }


if __name__ == "__main__":
    # Module-consistent small config:
    #   opts.cls_type='dex', opts.num_fc=2, opts.fc_sizes=[32],
    #   min_age=0, max_age=63 -> output_size = 64
    #   feat_size=128 (lane-dense stand-in for resnet18's 512), img 3x16x16
    B, C_IN, H, W = 2, 3, 16, 16
    C_FEAT, FC_SIZE = 128, 32
    MIN_AGE, MAX_AGE = 0, 63
    N_AGE = MAX_AGE - MIN_AGE + 1

    key = jax.random.PRNGKey(0)
    k_img, k_par = jax.random.split(key)
    img = jax.random.normal(k_img, (B, C_IN, H, W), dtype=jnp.float32)

    params = init_params(k_par, C_IN, C_FEAT, FC_SIZE, N_AGE)
    params["ages"] = jnp.arange(MIN_AGE, MAX_AGE + 1, 1.0,
                                dtype=jnp.float32).reshape(1, N_AGE)

    age_out, fc_out = age_model_forward(img, params)
    jax.block_until_ready((age_out, fc_out))

    assert age_out.shape == (B,)
    assert fc_out.shape == (B, N_AGE)
    assert bool(jnp.all(jnp.isfinite(age_out))) and bool(jnp.all(jnp.isfinite(fc_out)))
    print("KERNEL_OK")
</pallas_src>

<mosaic_0001>
module attributes {stable_mosaic.version = 11 : i64} {
  func.func @_cnn_gap_kernel(%arg0: i32, %arg1: memref<1x18x18x3xf32, #tpu.memory_space<vmem>>, %arg2: memref<9x3x128xbf16, #tpu.memory_space<vmem>>, %arg3: memref<1x128xf32, #tpu.memory_space<vmem>>, %arg4: memref<1x1x128xf32, #tpu.memory_space<vmem>>) attributes {dimension_semantics = [#tpu.dimension_semantics<parallel>], iteration_bounds = array<i64: 2>, scalar_prefetch = 0 : i64, scratch_operands = 0 : i64, tpu.core_type = #tpu.core_type<tc>, window_params = [{transform_indices = @transform_0, window_bounds = array<i64: 1, 18, 18, 3>}, {pipeline_mode = #tpu.pipeline_mode<synchronous>, transform_indices = @transform_1, window_bounds = array<i64: 9, 3, 128>}, {pipeline_mode = #tpu.pipeline_mode<synchronous>, transform_indices = @transform_2, window_bounds = array<i64: 1, 128>}, {transform_indices = @transform_3, window_bounds = array<i64: 1, 1, 128>}]} {
    %c0 = arith.constant 0 : index
    %c0_0 = arith.constant 0 : index
    %c0_1 = arith.constant 0 : index
    %c0_2 = arith.constant 0 : index
    %0 = vector.load %arg1[%c0, %c0_0, %c0_1, %c0_2] : memref<1x18x18x3xf32, #tpu.memory_space<vmem>>, vector<1x18x18x3xf32>
    %1 = vector.shape_cast %0 : vector<1x18x18x3xf32> to vector<18x18x3xf32>
    %cst = arith.constant 0.000000e+00 : f32
    %2 = vector.broadcast %cst : f32 to vector<1x128xf32>
    %cst_3 = arith.constant 0.000000e+00 : f32
    %3 = vector.broadcast %cst_3 : f32 to vector<128x128xf32>
    %4 = vector.extract_strided_slice %1 {offsets = [0, 0, 0], sizes = [8, 16, 3], strides = [1, 1, 1]} : vector<18x18x3xf32> to vector<8x16x3xf32>
    %5 = vector.shape_cast %4 : vector<8x16x3xf32> to vector<128x3xf32>
    %6 = arith.truncf %5 : vector<128x3xf32> to vector<128x3xbf16>
    %c0_4 = arith.constant 0 : index
    %c0_5 = arith.constant 0 : index
    %c0_6 = arith.constant 0 : index
    %7 = vector.load %arg2[%c0_4, %c0_5, %c0_6] : memref<9x3x128xbf16, #tpu.memory_space<vmem>>, vector<1x3x128xbf16>
    %8 = vector.shape_cast %7 : vector<1x3x128xbf16> to vector<3x128xbf16>
    %cst_7 = arith.constant dense<0.000000e+00> : vector<128x128xf32>
    %9 = tpu.matmul %6, %8, %cst_7 {dimension_numbers = #tpu.dot_dimension_numbers<[1], [0], [0], [1], [0, 0, 1, 1], [], []>} : vector<128x3xbf16>, vector<3x128xbf16>, vector<128x128xf32> -> vector<128x128xf32>
    %10 = arith.addf %3, %9 : vector<128x128xf32>
    %11 = vector.extract_strided_slice %1 {offsets = [0, 1, 0], sizes = [8, 16, 3], strides = [1, 1, 1]} : vector<18x18x3xf32> to vector<8x16x3xf32>
    %12 = vector.shape_cast %11 : vector<8x16x3xf32> to vector<128x3xf32>
    %13 = arith.truncf %12 : vector<128x3xf32> to vector<128x3xbf16>
    %c1 = arith.constant 1 : index
    %c0_8 = arith.constant 0 : index
    %c0_9 = arith.constant 0 : index
    %14 = vector.load %arg2[%c1, %c0_8, %c0_9] : memref<9x3x128xbf16, #tpu.memory_space<vmem>>, vector<1x3x128xbf16>
    %15 = vector.shape_cast %14 : vector<1x3x128xbf16> to vector<3x128xbf16>
    %cst_10 = arith.constant dense<0.000000e+00> : vector<128x128xf32>
    %16 = tpu.matmul %13, %15, %cst_10 {dimension_numbers = #tpu.dot_dimension_numbers<[1], [0], [0], [1], [0, 0, 1, 1], [], []>} : vector<128x3xbf16>, vector<3x128xbf16>, vector<128x128xf32> -> vector<128x128xf32>
    %17 = arith.addf %10, %16 : vector<128x128xf32>
    %18 = vector.extract_strided_slice %1 {offsets = [0, 2, 0], sizes = [8, 16, 3], strides = [1, 1, 1]} : vector<18x18x3xf32> to vector<8x16x3xf32>
    %19 = vector.shape_cast %18 : vector<8x16x3xf32> to vector<128x3xf32>
    %20 = arith.truncf %19 : vector<128x3xf32> to vector<128x3xbf16>
    %c2 = arith.constant 2 : index
    %c0_11 = arith.constant 0 : index
    %c0_12 = arith.constant 0 : index
    %21 = vector.load %arg2[%c2, %c0_11, %c0_12] : memref<9x3x128xbf16, #tpu.memory_space<vmem>>, vector<1x3x128xbf16>
    %22 = vector.shape_cast %21 : vector<1x3x128xbf16> to vector<3x128xbf16>
    %cst_13 = arith.constant dense<0.000000e+00> : vector<128x128xf32>
    %23 = tpu.matmul %20, %22, %cst_13 {dimension_numbers = #tpu.dot_dimension_numbers<[1], [0], [0], [1], [0, 0, 1, 1], [], []>} : vector<128x3xbf16>, vector<3x128xbf16>, vector<128x128xf32> -> vector<128x128xf32>
    %24 = arith.addf %17, %23 : vector<128x128xf32>
    %25 = vector.extract_strided_slice %1 {offsets = [1, 0, 0], sizes = [8, 16, 3], strides = [1, 1, 1]} : vector<18x18x3xf32> to vector<8x16x3xf32>
    %26 = vector.shape_cast %25 : vector<8x16x3xf32> to vector<128x3xf32>
    %27 = arith.truncf %26 : vector<128x3xf32> to vector<128x3xbf16>
    %c3 = arith.constant 3 : index
    %c0_14 = arith.constant 0 : index
    %c0_15 = arith.constant 0 : index
    %28 = vector.load %arg2[%c3, %c0_14, %c0_15] : memref<9x3x128xbf16, #tpu.memory_space<vmem>>, vector<1x3x128xbf16>
    %29 = vector.shape_cast %28 : vector<1x3x128xbf16> to vector<3x128xbf16>
    %cst_16 = arith.constant dense<0.000000e+00> : vector<128x128xf32>
    %30 = tpu.matmul %27, %29, %cst_16 {dimension_numbers = #tpu.dot_dimension_numbers<[1], [0], [0], [1], [0, 0, 1, 1], [], []>} : vector<128x3xbf16>, vector<3x128xbf16>, vector<128x128xf32> -> vector<128x128xf32>
    %31 = arith.addf %24, %30 : vector<128x128xf32>
    %32 = vector.extract_strided_slice %1 {offsets = [1, 1, 0], sizes = [8, 16, 3], strides = [1, 1, 1]} : vector<18x18x3xf32> to vector<8x16x3xf32>
    %33 = vector.shape_cast %32 : vector<8x16x3xf32> to vector<128x3xf32>
    %34 = arith.truncf %33 : vector<128x3xf32> to vector<128x3xbf16>
    %c4 = arith.constant 4 : index
    %c0_17 = arith.constant 0 : index
    %c0_18 = arith.constant 0 : index
    %35 = vector.load %arg2[%c4, %c0_17, %c0_18] : memref<9x3x128xbf16, #tpu.memory_space<vmem>>, vector<1x3x128xbf16>
    %36 = vector.shape_cast %35 : vector<1x3x128xbf16> to vector<3x128xbf16>
    %cst_19 = arith.constant dense<0.000000e+00> : vector<128x128xf32>
    %37 = tpu.matmul %34, %36, %cst_19 {dimension_numbers = #tpu.dot_dimension_numbers<[1], [0], [0], [1], [0, 0, 1, 1], [], []>} : vector<128x3xbf16>, vector<3x128xbf16>, vector<128x128xf32> -> vector<128x128xf32>
    %38 = arith.addf %31, %37 : vector<128x128xf32>
    %39 = vector.extract_strided_slice %1 {offsets = [1, 2, 0], sizes = [8, 16, 3], strides = [1, 1, 1]} : vector<18x18x3xf32> to vector<8x16x3xf32>
    %40 = vector.shape_cast %39 : vector<8x16x3xf32> to vector<128x3xf32>
    %41 = arith.truncf %40 : vector<128x3xf32> to vector<128x3xbf16>
    %c5 = arith.constant 5 : index
    %c0_20 = arith.constant 0 : index
    %c0_21 = arith.constant 0 : index
    %42 = vector.load %arg2[%c5, %c0_20, %c0_21] : memref<9x3x128xbf16, #tpu.memory_space<vmem>>, vector<1x3x128xbf16>
    %43 = vector.shape_cast %42 : vector<1x3x128xbf16> to vector<3x128xbf16>
    %cst_22 = arith.constant dense<0.000000e+00> : vector<128x128xf32>
    %44 = tpu.matmul %41, %43, %cst_22 {dimension_numbers = #tpu.dot_dimension_numbers<[1], [0], [0], [1], [0, 0, 1, 1], [], []>} : vector<128x3xbf16>, vector<3x128xbf16>, vector<128x128xf32> -> vector<128x128xf32>
    %45 = arith.addf %38, %44 : vector<128x128xf32>
    %46 = vector.extract_strided_slice %1 {offsets = [2, 0, 0], sizes = [8, 16, 3], strides = [1, 1, 1]} : vector<18x18x3xf32> to vector<8x16x3xf32>
    %47 = vector.shape_cast %46 : vector<8x16x3xf32> to vector<128x3xf32>
    %48 = arith.truncf %47 : vector<128x3xf32> to vector<128x3xbf16>
    %c6 = arith.constant 6 : index
    %c0_23 = arith.constant 0 : index
    %c0_24 = arith.constant 0 : index
    %49 = vector.load %arg2[%c6, %c0_23, %c0_24] : memref<9x3x128xbf16, #tpu.memory_space<vmem>>, vector<1x3x128xbf16>
    %50 = vector.shape_cast %49 : vector<1x3x128xbf16> to vector<3x128xbf16>
    %cst_25 = arith.constant dense<0.000000e+00> : vector<128x128xf32>
    %51 = tpu.matmul %48, %50, %cst_25 {dimension_numbers = #tpu.dot_dimension_numbers<[1], [0], [0], [1], [0, 0, 1, 1], [], []>} : vector<128x3xbf16>, vector<3x128xbf16>, vector<128x128xf32> -> vector<128x128xf32>
    %52 = arith.addf %45, %51 : vector<128x128xf32>
    %53 = vector.extract_strided_slice %1 {offsets = [2, 1, 0], sizes = [8, 16, 3], strides = [1, 1, 1]} : vector<18x18x3xf32> to vector<8x16x3xf32>
    %54 = vector.shape_cast %53 : vector<8x16x3xf32> to vector<128x3xf32>
    %55 = arith.truncf %54 : vector<128x3xf32> to vector<128x3xbf16>
    %c7 = arith.constant 7 : index
    %c0_26 = arith.constant 0 : index
    %c0_27 = arith.constant 0 : index
    %56 = vector.load %arg2[%c7, %c0_26, %c0_27] : memref<9x3x128xbf16, #tpu.memory_space<vmem>>, vector<1x3x128xbf16>
    %57 = vector.shape_cast %56 : vector<1x3x128xbf16> to vector<3x128xbf16>
    %cst_28 = arith.constant dense<0.000000e+00> : vector<128x128xf32>
    %58 = tpu.matmul %55, %57, %cst_28 {dimension_numbers = #tpu.dot_dimension_numbers<[1], [0], [0], [1], [0, 0, 1, 1], [], []>} : vector<128x3xbf16>, vector<3x128xbf16>, vector<128x128xf32> -> vector<128x128xf32>
    %59 = arith.addf %52, %58 : vector<128x128xf32>
    %60 = vector.extract_strided_slice %1 {offsets = [2, 2, 0], sizes = [8, 16, 3], strides = [1, 1, 1]} : vector<18x18x3xf32> to vector<8x16x3xf32>
    %61 = vector.shape_cast %60 : vector<8x16x3xf32> to vector<128x3xf32>
    %62 = arith.truncf %61 : vector<128x3xf32> to vector<128x3xbf16>
    %c8 = arith.constant 8 : index
    %c0_29 = arith.constant 0 : index
    %c0_30 = arith.constant 0 : index
    %63 = vector.load %arg2[%c8, %c0_29, %c0_30] : memref<9x3x128xbf16, #tpu.memory_space<vmem>>, vector<1x3x128xbf16>
    %64 = vector.shape_cast %63 : vector<1x3x128xbf16> to vector<3x128xbf16>
    %cst_31 = arith.constant dense<0.000000e+00> : vector<128x128xf32>
    %65 = tpu.matmul %62, %64, %cst_31 {dimension_numbers = #tpu.dot_dimension_numbers<[1], [0], [0], [1], [0, 0, 1, 1], [], []>} : vector<128x3xbf16>, vector<3x128xbf16>, vector<128x128xf32> -> vector<128x128xf32>
    %66 = arith.addf %59, %65 : vector<128x128xf32>
    %c0_32 = arith.constant 0 : index
    %c0_33 = arith.constant 0 : index
    %67 = vector.load %arg3[%c0_32, %c0_33] : memref<1x128xf32, #tpu.memory_space<vmem>>, vector<1x128xf32>
    %68 = vector.broadcast %67 : vector<1x128xf32> to vector<128x128xf32>
    %69 = arith.addf %66, %68 : vector<128x128xf32>
    %cst_34 = arith.constant 0.000000e+00 : f32
    %70 = vector.broadcast %cst_34 : f32 to vector<128x128xf32>
    %71 = arith.maximumf %69, %70 : vector<128x128xf32>
    %cst_35 = arith.constant dense<0.000000e+00> : vector<128xf32>
    %72 = vector.multi_reduction <add>, %71, %cst_35 [0] : vector<128x128xf32> to vector<128xf32>
    %73 = vector.shape_cast %72 : vector<128xf32> to vector<1x128xf32>
    %74 = arith.addf %2, %73 : vector<1x128xf32>
    %cst_36 = arith.constant 0.000000e+00 : f32
    %75 = vector.broadcast %cst_36 : f32 to vector<128x128xf32>
    %76 = vector.extract_strided_slice %1 {offsets = [8, 0, 0], sizes = [8, 16, 3], strides = [1, 1, 1]} : vector<18x18x3xf32> to vector<8x16x3xf32>
    %77 = vector.shape_cast %76 : vector<8x16x3xf32> to vector<128x3xf32>
    %78 = arith.truncf %77 : vector<128x3xf32> to vector<128x3xbf16>
    %c0_37 = arith.constant 0 : index
    %c0_38 = arith.constant 0 : index
    %c0_39 = arith.constant 0 : index
    %79 = vector.load %arg2[%c0_37, %c0_38, %c0_39] : memref<9x3x128xbf16, #tpu.memory_space<vmem>>, vector<1x3x128xbf16>
    %80 = vector.shape_cast %79 : vector<1x3x128xbf16> to vector<3x128xbf16>
    %cst_40 = arith.constant dense<0.000000e+00> : vector<128x128xf32>
    %81 = tpu.matmul %78, %80, %cst_40 {dimension_numbers = #tpu.dot_dimension_numbers<[1], [0], [0], [1], [0, 0, 1, 1], [], []>} : vector<128x3xbf16>, vector<3x128xbf16>, vector<128x128xf32> -> vector<128x128xf32>
    %82 = arith.addf %75, %81 : vector<128x128xf32>
    %83 = vector.extract_strided_slice %1 {offsets = [8, 1, 0], sizes = [8, 16, 3], strides = [1, 1, 1]} : vector<18x18x3xf32> to vector<8x16x3xf32>
    %84 = vector.shape_cast %83 : vector<8x16x3xf32> to vector<128x3xf32>
    %85 = arith.truncf %84 : vector<128x3xf32> to vector<128x3xbf16>
    %c1_41 = arith.constant 1 : index
    %c0_42 = arith.constant 0 : index
    %c0_43 = arith.constant 0 : index
    %86 = vector.load %arg2[%c1_41, %c0_42, %c0_43] : memref<9x3x128xbf16, #tpu.memory_space<vmem>>, vector<1x3x128xbf16>
    %87 = vector.shape_cast %86 : vector<1x3x128xbf16> to vector<3x128xbf16>
    %cst_44 = arith.constant dense<0.000000e+00> : vector<128x128xf32>
    %88 = tpu.matmul %85, %87, %cst_44 {dimension_numbers = #tpu.dot_dimension_numbers<[1], [0], [0], [1], [0, 0, 1, 1], [], []>} : vector<128x3xbf16>, vector<3x128xbf16>, vector<128x128xf32> -> vector<128x128xf32>
    %89 = arith.addf %82, %88 : vector<128x128xf32>
    %90 = vector.extract_strided_slice %1 {offsets = [8, 2, 0], sizes = [8, 16, 3], strides = [1, 1, 1]} : vector<18x18x3xf32> to vector<8x16x3xf32>
    %91 = vector.shape_cast %90 : vector<8x16x3xf32> to vector<128x3xf32>
    %92 = arith.truncf %91 : vector<128x3xf32> to vector<128x3xbf16>
    %c2_45 = arith.constant 2 : index
    %c0_46 = arith.constant 0 : index
    %c0_47 = arith.constant 0 : index
    %93 = vector.load %arg2[%c2_45, %c0_46, %c0_47] : memref<9x3x128xbf16, #tpu.memory_space<vmem>>, vector<1x3x128xbf16>
    %94 = vector.shape_cast %93 : vector<1x3x128xbf16> to vector<3x128xbf16>
    %cst_48 = arith.constant dense<0.000000e+00> : vector<128x128xf32>
    %95 = tpu.matmul %92, %94, %cst_48 {dimension_numbers = #tpu.dot_dimension_numbers<[1], [0], [0], [1], [0, 0, 1, 1], [], []>} : vector<128x3xbf16>, vector<3x128xbf16>, vector<128x128xf32> -> vector<128x128xf32>
    %96 = arith.addf %89, %95 : vector<128x128xf32>
    %97 = vector.extract_strided_slice %1 {offsets = [9, 0, 0], sizes = [8, 16, 3], strides = [1, 1, 1]} : vector<18x18x3xf32> to vector<8x16x3xf32>
    %98 = vector.shape_cast %97 : vector<8x16x3xf32> to vector<128x3xf32>
    %99 = arith.truncf %98 : vector<128x3xf32> to vector<128x3xbf16>
    %c3_49 = arith.constant 3 : index
    %c0_50 = arith.constant 0 : index
    %c0_51 = arith.constant 0 : index
    %100 = vector.load %arg2[%c3_49, %c0_50, %c0_51] : memref<9x3x128xbf16, #tpu.memory_space<vmem>>, vector<1x3x128xbf16>
    %101 = vector.shape_cast %100 : vector<1x3x128xbf16> to vector<3x128xbf16>
    %cst_52 = arith.constant dense<0.000000e+00> : vector<128x128xf32>
    %102 = tpu.matmul %99, %101, %cst_52 {dimension_numbers = #tpu.dot_dimension_numbers<[1], [0], [0], [1], [0, 0, 1, 1], [], []>} : vector<128x3xbf16>, vector<3x128xbf16>, vector<128x128xf32> -> vector<128x128xf32>
    %103 = arith.addf %96, %102 : vector<128x128xf32>
    %104 = vector.extract_strided_slice %1 {offsets = [9, 1, 0], sizes = [8, 16, 3], strides = [1, 1, 1]} : vector<18x18x3xf32> to vector<8x16x3xf32>
    %105 = vector.shape_cast %104 : vector<8x16x3xf32> to vector<128x3xf32>
    %106 = arith.truncf %105 : vector<128x3xf32> to vector<128x3xbf16>
    %c4_53 = arith.constant 4 : index
    %c0_54 = arith.constant 0 : index
    %c0_55 = arith.constant 0 : index
    %107 = vector.load %arg2[%c4_53, %c0_54, %c0_55] : memref<9x3x128xbf16, #tpu.memory_space<vmem>>, vector<1x3x128xbf16>
    %108 = vector.shape_cast %107 : vector<1x3x128xbf16> to vector<3x128xbf16>
    %cst_56 = arith.constant dense<0.000000e+00> : vector<128x128xf32>
    %109 = tpu.matmul %106, %108, %cst_56 {dimension_numbers = #tpu.dot_dimension_numbers<[1], [0], [0], [1], [0, 0, 1, 1], [], []>} : vector<128x3xbf16>, vector<3x128xbf16>, vector<128x128xf32> -> vector<128x128xf32>
    %110 = arith.addf %103, %109 : vector<128x128xf32>
    %111 = vector.extract_strided_slice %1 {offsets = [9, 2, 0], sizes = [8, 16, 3], strides = [1, 1, 1]} : vector<18x18x3xf32> to vector<8x16x3xf32>
    %112 = vector.shape_cast %111 : vector<8x16x3xf32> to vector<128x3xf32>
    %113 = arith.truncf %112 : vector<128x3xf32> to vector<128x3xbf16>
    %c5_57 = arith.constant 5 : index
    %c0_58 = arith.constant 0 : index
    %c0_59 = arith.constant 0 : index
    %114 = vector.load %arg2[%c5_57, %c0_58, %c0_59] : memref<9x3x128xbf16, #tpu.memory_space<vmem>>, vector<1x3x128xbf16>
    %115 = vector.shape_cast %114 : vector<1x3x128xbf16> to vector<3x128xbf16>
    %cst_60 = arith.constant dense<0.000000e+00> : vector<128x128xf32>
    %116 = tpu.matmul %113, %115, %cst_60 {dimension_numbers = #tpu.dot_dimension_numbers<[1], [0], [0], [1], [0, 0, 1, 1], [], []>} : vector<128x3xbf16>, vector<3x128xbf16>, vector<128x128xf32> -> vector<128x128xf32>
    %117 = arith.addf %110, %116 : vector<128x128xf32>
    %118 = vector.extract_strided_slice %1 {offsets = [10, 0, 0], sizes = [8, 16, 3], strides = [1, 1, 1]} : vector<18x18x3xf32> to vector<8x16x3xf32>
    %119 = vector.shape_cast %118 : vector<8x16x3xf32> to vector<128x3xf32>
    %120 = arith.truncf %119 : vector<128x3xf32> to vector<128x3xbf16>
    %c6_61 = arith.constant 6 : index
    %c0_62 = arith.constant 0 : index
    %c0_63 = arith.constant 0 : index
    %121 = vector.load %arg2[%c6_61, %c0_62, %c0_63] : memref<9x3x128xbf16, #tpu.memory_space<vmem>>, vector<1x3x128xbf16>
    %122 = vector.shape_cast %121 : vector<1x3x128xbf16> to vector<3x128xbf16>
    %cst_64 = arith.constant dense<0.000000e+00> : vector<128x128xf32>
    %123 = tpu.matmul %120, %122, %cst_64 {dimension_numbers = #tpu.dot_dimension_numbers<[1], [0], [0], [1], [0, 0, 1, 1], [], []>} : vector<128x3xbf16>, vector<3x128xbf16>, vector<128x128xf32> -> vector<128x128xf32>
    %124 = arith.addf %117, %123 : vector<128x128xf32>
    %125 = vector.extract_strided_slice %1 {offsets = [10, 1, 0], sizes = [8, 16, 3], strides = [1, 1, 1]} : vector<18x18x3xf32> to vector<8x16x3xf32>
    %126 = vector.shape_cast %125 : vector<8x16x3xf32> to vector<128x3xf32>
    %127 = arith.truncf %126 : vector<128x3xf32> to vector<128x3xbf16>
    %c7_65 = arith.constant 7 : index
    %c0_66 = arith.constant 0 : index
    %c0_67 = arith.constant 0 : index
    %128 = vector.load %arg2[%c7_65, %c0_66, %c0_67] : memref<9x3x128xbf16, #tpu.memory_space<vmem>>, vector<1x3x128xbf16>
    %129 = vector.shape_cast %128 : vector<1x3x128xbf16> to vector<3x128xbf16>
    %cst_68 = arith.constant dense<0.000000e+00> : vector<128x128xf32>
    %130 = tpu.matmul %127, %129, %cst_68 {dimension_numbers = #tpu.dot_dimension_numbers<[1], [0], [0], [1], [0, 0, 1, 1], [], []>} : vector<128x3xbf16>, vector<3x128xbf16>, vector<128x128xf32> -> vector<128x128xf32>
    %131 = arith.addf %124, %130 : vector<128x128xf32>
    %132 = vector.extract_strided_slice %1 {offsets = [10, 2, 0], sizes = [8, 16, 3], strides = [1, 1, 1]} : vector<18x18x3xf32> to vector<8x16x3xf32>
    %133 = vector.shape_cast %132 : vector<8x16x3xf32> to vector<128x3xf32>
    %134 = arith.truncf %133 : vector<128x3xf32> to vector<128x3xbf16>
    %c8_69 = arith.constant 8 : index
    %c0_70 = arith.constant 0 : index
    %c0_71 = arith.constant 0 : index
    %135 = vector.load %arg2[%c8_69, %c0_70, %c0_71] : memref<9x3x128xbf16, #tpu.memory_space<vmem>>, vector<1x3x128xbf16>
    %136 = vector.shape_cast %135 : vector<1x3x128xbf16> to vector<3x128xbf16>
    %cst_72 = arith.constant dense<0.000000e+00> : vector<128x128xf32>
    %137 = tpu.matmul %134, %136, %cst_72 {dimension_numbers = #tpu.dot_dimension_numbers<[1], [0], [0], [1], [0, 0, 1, 1], [], []>} : vector<128x3xbf16>, vector<3x128xbf16>, vector<128x128xf32> -> vector<128x128xf32>
    %138 = arith.addf %131, %137 : vector<128x128xf32>
    %c0_73 = arith.constant 0 : index
    %c0_74 = arith.constant 0 : index
    %139 = vector.load %arg3[%c0_73, %c0_74] : memref<1x128xf32, #tpu.memory_space<vmem>>, vector<1x128xf32>
    %140 = vector.broadcast %139 : vector<1x128xf32> to vector<128x128xf32>
    %141 = arith.addf %138, %140 : vector<128x128xf32>
    %cst_75 = arith.constant 0.000000e+00 : f32
    %142 = vector.broadcast %cst_75 : f32 to vector<128x128xf32>
    %143 = arith.maximumf %141, %142 : vector<128x128xf32>
    %cst_76 = arith.constant dense<0.000000e+00> : vector<128xf32>
    %144 = vector.multi_reduction <add>, %143, %cst_76 [0] : vector<128x128xf32> to vector<128xf32>
    %145 = vector.shape_cast %144 : vector<128xf32> to vector<1x128xf32>
    %146 = arith.addf %74, %145 : vector<1x128xf32>
    %cst_77 = arith.constant 3.906250e-03 : f32
    %147 = vector.broadcast %cst_77 : f32 to vector<1x128xf32>
    %148 = arith.mulf %146, %147 : vector<1x128xf32>
    %c0_78 = arith.constant 0 : index
    %c0_79 = arith.constant 0 : index
    %c0_80 = arith.constant 0 : index
    %149 = vector.load %arg4[%c0_78, %c0_79, %c0_80] : memref<1x1x128xf32, #tpu.memory_space<vmem>>, vector<1x1x128xf32>
    %150 = vector.shape_cast %149 : vector<1x1x128xf32> to vector<1x128xf32>
    %151 = vector.shape_cast %148 : vector<1x128xf32> to vector<1x1x128xf32>
    tpu.vector_store %arg4[%c0_78, %c0_79, %c0_80], %151 {strides = array<i32>} : memref<1x1x128xf32, #tpu.memory_space<vmem>>, vector<1x1x128xf32>,
    return
  }
  func.func @transform_0(%arg0: i32) -> (i32, i32, i32, i32) {
    %c0_i32 = arith.constant 0 : i32
    %c0_i32_0 = arith.constant 0 : i32
    %c0_i32_1 = arith.constant 0 : i32
    %c0_i32_2 = arith.constant 0 : i32
    return %arg0, %c0_i32, %c0_i32_0, %c0_i32_1 : i32, i32, i32, i32
  }
  func.func @transform_1(%arg0: i32) -> (i32, i32, i32) {
    %c0_i32 = arith.constant 0 : i32
    %c0_i32_0 = arith.constant 0 : i32
    %c0_i32_1 = arith.constant 0 : i32
    %c0_i32_2 = arith.constant 0 : i32
    return %c0_i32, %c0_i32_0, %c0_i32_1 : i32, i32, i32
  }
  func.func @transform_2(%arg0: i32) -> (i32, i32) {
    %c0_i32 = arith.constant 0 : i32
    %c0_i32_0 = arith.constant 0 : i32
    %c0_i32_1 = arith.constant 0 : i32
    return %c0_i32, %c0_i32_0 : i32, i32
  }
  func.func @transform_3(%arg0: i32) -> (i32, i32, i32) {
    %c0_i32 = arith.constant 0 : i32
    %c0_i32_0 = arith.constant 0 : i32
    %c0_i32_1 = arith.constant 0 : i32
    return %arg0, %c0_i32, %c0_i32_0 : i32, i32, i32
  }
}

</mosaic_0001>

<bundles_post_ra>
// kernel: tpu_custom_call.1
= control target key start
LH: loop header
LB: loop body
LE: loop exit
PB: predicated region body
PF: predicated region fallthrough
CT: control target
= control target key end

     0   :  { %8 = vsyncpa [#allocation3], 0  ;;  %s4904_s0 = inlined_call_operand.vmem [shape: f32[2,18,18,3], index: 0, kind: input, shape index: {}]   ;;  %s4905_s1 = inlined_call_operand.vmem [shape: bf16[9,3,128], index: 1, kind: input, shape index: {}]   ;;  %s4906_s2 = inlined_call_operand.vmem [shape: f32[1,128], index: 2, kind: input, shape index: {}]   ;;  %s4907_s3 = inlined_call_operand.hbm [shape: f32[2,1,128], index: 3, kind: output, shape index: {}]  }
   0x1   :  { %10 = vsyncpa [#allocation3 + $0x1], 0  ;;  %s3981_s12 = smov 0   ;;  %s3983_s13 = smov 0  }
   0x2   :  { %s3985_s14 = smov 0   ;;  %s3987_s15 = smov 0  }
   0x3 LB: > { %s4002_s16 = sadd.s32 4294967295, %s3957_s15   ;;  %s2951_s17 = sadd.s32 4294967294, %s3957_s15   ;;  %s3957_s15 = sphi %s3987_s15, %s4976_s15   ;;  %s3953_s14 = sphi %s3985_s14, %s4975_s14   ;;  %s3949_s13 = sphi %s3983_s13, %s4974_s13   ;;  %s3945_s12 = sphi %s3981_s12, %s4973_s12  }
   0x4   : > { %s4006_s18 = sadd.s32 1, %s3957_s15   ;;  %s91_s19 = sadd.s32 1, %s3953_s14 }
   0x5   : > { %s88_s20 = ssub.s32 %s3957_s15, %s4006_s18  ;;  %p101_p0 = scmp.ne.s32.totalorder %s3953_s14, %s3949_s13 }
   0x6   : > { %p89_p1 = scmp.eq.s32.totalorder %s88_s20, 0  ;;  %p102_p2 = scmp.eq.s32.totalorder %s4002_s16, 1 }
   0x7   : > { %p107_p3 = scmp.ne.s32.totalorder %s3949_s13, %s3945_s12  ;;  %p108_p4 = scmp.eq.s32.totalorder %s2951_s17, 1 }
   0x8   : > { %s4017_s21 = scalar_select %p89_p1, %s3953_s14, %s91_s19  }
   0x9   : > { %p4019_p5 = por %p102_p2, %p101_p0  ;;  %p4023_p6 = por %p108_p4, %p107_p3 }
   0xa   : > { %p2954_p7 = scmp.ge.s32.totalorder %s3957_s15, 1  ;;  %p140_p8 = scmp.lt.s32.totalorder %s3957_s15, 3 }
   0xc   : > { %p141_p9 = pnand %p2954_p7, %p140_p8 }
   0xe   : > { %144 = sbr.rel (%p141_p9) target bundleno = 574 (0x23e), region = 32 }
  0x15   : > { %v2956_v0 = vld [vmem:[%s4905_s1 + $0x2] sm:$0x3]  ;;  %vm348_vm0 = vcmask 1040384   ;;  %vm349_vm1 = vcmask 1041408   ;;  %p163_p10 = scmp.lt.s32.totalorder %s4002_s16, 1  ;;  %v3959_v1 = vmov 65535  }
  0x16   : > { %v350_v2 = vsel %vm348_vm0, 4294967295, %v3959_v1  ;;  %v231_v3 = vld [vmem:[%s4905_s1] sm:$0x3]  ;;  %vm256_vm2 = vcmask 1046528   ;;  %vm323_vm3 = vcmask 23552   ;;  %vm576_vm4 = vcmask 1045504  }
  0x17   : > { %v4036_v4 = vsel %vm349_vm1, %v350_v2, 0  ;;  %s164_s28 = scalar_select %p163_p10, %s4002_s16, 1  ;;  %v2973_v34 = vld [vmem:[%s4905_s1 + $0x4] sm:$0x3] }
  0x18   : > { %v353_v5 = vand.u32 %v2956_v0, %v4036_v4  ;;  %v4041_v6 = vand.u32 %v4036_v4, %v231_v3  ;;  %v4140_v50 = vand.u32 %v2973_v34, %v4036_v4  ;;  %s161_s4 = sand.u32 1, %s3949_s13  }
  0x19   : > { %s3854_s29 = smul.u32 432, %s164_s28  ;;  %s162_s6 = scalar_lea.vmem [#allocation2], %s161_s4 }
  0x1a   : > { %3274 = vmatprep.subr.bf16.mxu0 %v353_v5  ;;  %3436 = vmatprep.subr.bf16.mxu1 %v353_v5  ;;  %s2896_s7 = sshll.u32 %s162_s6, 4  ;;  %s2884_s11 = scalar_lea.sflag [#allocation3], %s161_s4  ;;  %s4864_s7 = int_to_ptr.vmem [resolvable:$true] %s2896_s7 }
  0x1b   : > { %3275 = vmatpush3.bf16.msra.mxu0 %v353_v5  ;;  %3437 = vmatpush3.bf16.msra.mxu1 %v353_v5  ;;  %s4046_s5 = scalar_lea.vmem %s4904_s0, %s3854_s29  ;;  %s3895_s17 = scalar_lea.vmem %s4864_s7, 16 }
  0x1c   : > { %v4049_v7 = vld [vmem:[%s4046_s5] sm:$0xff]  ;;  %v4052_v8 = vld [vmem:[%s4046_s5 + $0x8] sm:$0xff]  ;;  %v4055_v9 = vld [vmem:[%s4046_s5 + $0x10] sm:$0x3]  ;;  %3292 = vmatprep.subr.bf16.mxu0 %v4041_v6  ;;  %3454 = vmatprep.subr.bf16.mxu1 %v4041_v6  ;;  %p3896_p11 = scmp.ne.s32.totalorder %s4864_s7, %s3895_s17 }
  0x1d   : > { %v257_v10 = vrot.slane %v4049_v7, 1  ;;  %v258_v11 = vrot.slane %v4052_v8, 1  ;;  %v260_v12 = vrot.slane %v4055_v9, 1  ;;  %v4063_v13 = vld [vmem:[%s4046_s5 + $0xc0] sm:$0xff]  ;;  %v4066_v14 = vld [vmem:[%s4046_s5 + $0xc8] sm:$0xff]  ;;  %v4077_v21 = vld [vmem:[%s4046_s5 + $0x18] sm:$0xff] }
  0x1e   : > { %v4069_v15 = vld [vmem:[%s4046_s5 + $0xd0] sm:$0x3]  ;;  %v908_v16 = vrot.slane %v4063_v13, 1  ;;  %v909_v17 = vrot.slane %v4066_v14, 1  ;;  %v4080_v22 = vld [vmem:[%s4046_s5 + $0x20] sm:$0xff]  ;;  %v262_v26 = vrot.slane %v4077_v21, 1  ;;  %p3897_p12 = pnand %p3896_p11, %p4019_p5 }
  0x1f   : > { %4939 = vst [vmem:[#allocation5_spill] sm:$0xff] %v4069_v15  ;;  %v259_v18 = vsel %vm256_vm2, %v257_v10, %v258_v11  ;;  %v261_v19 = vsel %vm256_vm2, %v258_v11, %v260_v12  ;;  %v911_v20 = vrot.slane %v4069_v15, 1  ;;  %v4083_v23 = vld [vmem:[%s4046_s5 + $0x28] sm:$0x3]  ;;  %v263_v27 = vrot.slane %v4080_v22, 1  ;;  %v4089_v28 = vld [vmem:[%s4046_s5 + $0xd8] sm:$0xff] }
  0x20   : > { %v313_v24 = vpack.c.bf16 %v261_v19, %v259_v18  ;;  %v910_v25 = vsel %vm256_vm2, %v908_v16, %v909_v17  ;;  %v4092_v29 = vld [vmem:[%s4046_s5 + $0xe0] sm:$0xff]  ;;  %v4095_v30 = vld [vmem:[%s4046_s5 + $0xe8] sm:$0x3]  ;;  %v265_v32 = vrot.slane %v4083_v23, 1  ;;  %v4100_v33 = vld [vmem:[%s4046_s5 + $0x30] sm:$0xff]  ;;  %v1291_v37 = vrot.slane %v4089_v28, 1  ;;  %p3898_p13 = pneg %p3897_p12 }
  0x21   : > { %v912_v31 = vsel %vm256_vm2, %v909_v17, %v911_v20  ;;  %v264_v36 = vsel %vm256_vm2, %v262_v26, %v263_v27  ;;  %v4111_v38 = vld [vmem:[%s4046_s5 + $0x38] sm:$0xff]  ;;  %v4114_v39 = vld [vmem:[%s4046_s5 + $0x40] sm:$0x3]  ;;  %v1292_v41 = vrot.slane %v4092_v29, 1  ;;  %v1294_v42 = vrot.slane %v4095_v30, 1  ;;  %v4120_v43 = vld [vmem:[%s4046_s5 + $0xf0] sm:$0xff] }
  0x22   : > { %3276 = vmatprep.mubr.msk.bf16.mxu0 %vm323_vm3, %v313_v24  ;;  %v4106_v35 = vpack.c.bf16 %v912_v31, %v910_v25  ;;  %4941 = vst [vmem:[#allocation7_spill] sm:$0xff] %v4114_v39  ;;  %v266_v40 = vsel %vm256_vm2, %v263_v27, %v265_v32  ;;  %v4123_v44 = vld [vmem:[%s4046_s5 + $0xf8] sm:$0xff]  ;;  %v4126_v45 = vld [vmem:[%s4046_s5 + $0x100] sm:$0x3]  ;;  %v267_v47 = vrot.slane %v4100_v33, 1  ;;  %v4134_v48 = vld [vmem:[%s4046_s5 + $0x48] sm:$0xff] }
  0x23   : > { %4942 = vst [vmem:[#allocation8_spill] sm:$0xff] %v4126_v45  ;;  %v4130_v46 = vpack.c.bf16 %v266_v40, %v264_v36  ;;  %v4137_v49 = vld [vmem:[%s4046_s5 + $0x50] sm:$0xff]  ;;  %v1293_v51 = vsel %vm256_vm2, %v1291_v37, %v1292_v41  ;;  %v1295_v52 = vsel %vm256_vm2, %v1292_v41, %v1294_v42  ;;  %v268_v53 = vrot.slane %v4111_v38, 1  ;;  %v4147_v55 = vld [vmem:[%s4046_s5 + $0x58] sm:$0x3]  ;;  %v4157_v60 = vld [vmem:[%s4046_s5 + $0x108] sm:$0xff] }
  0x24   : > { %4940 = vst [vmem:[#allocation6_spill] sm:$0xff] %v4106_v35  ;;  %3438 = vmatprep.mubr.msk.bf16.mxu1 %vm323_vm3, %v4106_v35  ;;  %v270_v54 = vrot.slane %v4114_v39, 1  ;;  %v4151_v56 = vpack.c.bf16 %v1295_v52, %v1293_v51  ;;  %v1634_v57 = vrot.slane %v4120_v43, 1  ;;  %v1635_v58 = vrot.slane %v4123_v44, 1  ;;  %v4160_v61 = vld [vmem:[%s4046_s5 + $0x110] sm:$0xff]  ;;  %v4171_v3 = vld [vmem:[%s4046_s5 + $0x60] sm:$0xff] }
  0x25   : > { %4943 = vst [vmem:[#allocation9_spill] sm:$0xff] %v4130_v46  ;;  %3277 = vmatmul.mubr.msk.bf16.vlgmr.msra.gmra.mrb[0].mxu0 %vm323_vm3, %v4130_v46  ;;  %v1637_v59 = vrot.slane %v4126_v45, 1  ;;  %v269_v62 = vsel %vm256_vm2, %v267_v47, %v268_v53  ;;  %v272_v0 = vrot.slane %v4134_v48, 1  ;;  %v273_v1 = vrot.slane %v4137_v49, 1  ;;  %v4168_v2 = vld [vmem:[%s4046_s5 + $0x118] sm:$0x3] }
  0x26   : > { %4944 = vst [vmem:[#allocation10_spill] sm:$0xff] %v4151_v56  ;;  %3293 = vmatpush3.bf16.msra.mxu0 %v4041_v6  ;;  %v271_v63 = vsel %vm256_vm2, %v268_v53, %v270_v54  ;;  %v4174_v5 = vld [vmem:[%s4046_s5 + $0x68] sm:$0xff]  ;;  %3439 = vmatmul.mubr.msk.bf16.vlgmr.msra.gmra.mrb[0].mxu1 %vm323_vm3, %v4151_v56  ;;  %v1636_v11 = vsel %vm256_vm2, %v1634_v57, %v1635_v58  ;;  %v275_v16 = vrot.slane %v4147_v55, 1  ;;  %v4184_v17 = vld [vmem:[%s4046_s5 + $0x70] sm:$0x3]  ;;  %v4187_v18 = vld [vmem:[%s4046_s5 + $0x120] sm:$0xff] }
  0x27   : > { %v4178_v10 = vpack.c.bf16 %v271_v63, %v269_v62  ;;  %v1638_v12 = vsel %vm256_vm2, %v1635_v58, %v1637_v59  ;;  %4946 = vst [vmem:[#allocation12_spill] sm:$0xff] %v4184_v17  ;;  %3310 = vmatprep.subr.bf16.mxu0 %v4140_v50  ;;  %3455 = vmatpush3.bf16.msra.mxu1 %v4041_v6  ;;  %v1639_v24 = vrot.slane %v4157_v60, 1  ;;  %v1640_v25 = vrot.slane %v4160_v61, 1  ;;  %v4197_v26 = vld [vmem:[%s4046_s5 + $0x128] sm:$0xff]  ;;  %v4200_v27 = vld [vmem:[%s4046_s5 + $0x130] sm:$0x3] }
  0x28   : > { %v4191_v19 = vpack.c.bf16 %v1638_v12, %v1636_v11  ;;  %v274_v20 = vsel %vm256_vm2, %v272_v0, %v273_v1  ;;  %v276_v31 = vsel %vm256_vm2, %v273_v1, %v275_v16  ;;  %v1642_v6 = vrot.slane %v4168_v2, 1  ;;  %v4209_v36 = vld [vmem:[%s4046_s5 + $0x78] sm:$0xff]  ;;  %v4212_v37 = vld [vmem:[%s4046_s5 + $0x80] sm:$0xff]  ;;  %3472 = vmatprep.subr.bf16.mxu1 %v4140_v50  ;;  %v4223_v51 = vld [vmem:[%s4046_s5 + $0x88] sm:$0x3] }
  0x29   : > { %4945 = vst [vmem:[#allocation11_spill] sm:$0xff] %v4178_v10  ;;  %3280 = vmatprep.mubr.msk.bf16.mxu0 %vm323_vm3, %v4178_v10  ;;  %v277_v32 = vrot.slane %v4171_v3, 1  ;;  %v278_v34 = vrot.slane %v4174_v5, 1  ;;  %v4217_v40 = vpack.c.bf16 %v276_v31, %v274_v20  ;;  %v1641_v41 = vsel %vm256_vm2, %v1639_v24, %v1640_v25  ;;  %v4230_v58 = vld [vmem:[%s4046_s5 + $0x138] sm:$0xff]  ;;  %v4233_v59 = vld [vmem:[%s4046_s5 + $0x140] sm:$0xff]  ;;  %v4244_v12 = vld [vmem:[%s4046_s5 + $0x90] sm:$0xff] }
  0x2a   : > { %4947 = vst [vmem:[#allocation13_spill] sm:$0xff] %v4191_v19  ;;  %3442 = vmatprep.mubr.msk.bf16.mxu1 %vm323_vm3, %v4191_v19  ;;  %v280_v42 = vrot.slane %v4184_v17, 1  ;;  %v1644_v47 = vrot.slane %v4187_v18, 1  ;;  %v1643_v52 = vsel %vm256_vm2, %v1640_v25, %v1642_v6  ;;  %v1645_v54 = vrot.slane %v4197_v26, 1  ;;  %v4241_v11 = vld [vmem:[%s4046_s5 + $0x148] sm:$0x3] }
  0x2b   : > { %4948 = vst [vmem:[#allocation14_spill] sm:$0xff] %v4217_v40  ;;  %v279_v53 = vsel %vm256_vm2, %v277_v32, %v278_v34  ;;  %v1647_v57 = vrot.slane %v4200_v27, 1  ;;  %v4235_v62 = vpack.c.bf16 %v1643_v52, %v1641_v41  ;;  %v282_v0 = vrot.slane %v4209_v36, 1  ;;  %v4247_v16 = vld [vmem:[%s4046_s5 + $0x98] sm:$0xff]  ;;  %v4257_v6 = vld [vmem:[%s4046_s5 + $0xa0] sm:$0x3] }
  0x2c   : > { %v281_v63 = vsel %vm256_vm2, %v278_v34, %v280_v42  ;;  %v283_v1 = vrot.slane %v4212_v37, 1  ;;  %v1646_v24 = vsel %vm256_vm2, %v1644_v47, %v1645_v54  ;;  %v285_v31 = vrot.slane %v4223_v51, 1  ;;  %v4260_v32 = vld [vmem:[%s4046_s5 + $0x150] sm:$0xff]  ;;  %v4268_v47 = vld [vmem:[%s4046_s5 + $0x158] sm:$0xff] }
  0x2d   : > { %4949 = vst [vmem:[#allocation15_spill] sm:$0xff] %v4235_v62  ;;  %3281 = vmatmul.mubr.msk.bf16.gmra.mrb[4].mxu0 %vm323_vm3, %v4217_v40  ;;  %v4251_v20 = vpack.c.bf16 %v281_v63, %v279_v53  ;;  %v1648_v25 = vsel %vm256_vm2, %v1645_v54, %v1647_v57  ;;  %v1649_v42 = vrot.slane %v4230_v58, 1  ;;  %v1650_v52 = vrot.slane %v4233_v59, 1  ;;  %v4271_v53 = vld [vmem:[%s4046_s5 + $0x160] sm:$0x3] }
  0x2e   : > { %v4262_v34 = vpack.c.bf16 %v1648_v25, %v1646_v24  ;;  %v284_v41 = vsel %vm256_vm2, %v282_v0, %v283_v1  ;;  %3443 = vmatmul.mubr.msk.bf16.gmra.mrb[4].mxu1 %vm323_vm3, %v4235_v62  ;;  %v286_v54 = vsel %vm256_vm2, %v283_v1, %v285_v31  ;;  %v1652_v57 = vrot.slane %v4241_v11, 1  ;;  %v4282_v24 = vld [vmem:[%s4046_s5 + $0xa8] sm:$0xff]  ;;  %v4285_v25 = vld [vmem:[%s4046_s5 + $0xb0] sm:$0xff]  ;;  %v4295_v62 = vld [vmem:[%s4046_s5 + $0xb8] sm:$0x3] }
  0x2f   : > { %4950 = vst [vmem:[#allocation16_spill] sm:$0xff] %v4251_v20  ;;  %3284 = vmatprep.mubr.msk.bf16.mxu0 %vm323_vm3, %v4251_v20  ;;  %v287_v63 = vrot.slane %v4244_v12, 1  ;;  %v288_v0 = vrot.slane %v4247_v16, 1  ;;  %v4289_v35 = vpack.c.bf16 %v286_v54, %v284_v41  ;;  %v1651_v1 = vsel %vm256_vm2, %v1649_v42, %v1650_v52  ;;  %v4305_v41 = vld [vmem:[%s4046_s5 + $0x170] sm:$0xff]  ;;  %v4313_v45 = vld [vmem:[%s4046_s5 + $0x178] sm:$0x3] }
  0x30   : > { %4951 = vst [vmem:[#allocation17_spill] sm:$0xff] %v4262_v34  ;;  %3446 = vmatprep.mubr.msk.bf16.mxu1 %vm323_vm3, %v4262_v34  ;;  %v290_v31 = vrot.slane %v4257_v6, 1  ;;  %v1654_v20 = vrot.slane %v4260_v32, 1  ;;  %v1653_v19 = vsel %vm256_vm2, %v1650_v52, %v1652_v57  ;;  %v1655_v10 = vrot.slane %v4268_v47, 1  ;;  %v4302_v34 = vld [vmem:[%s4046_s5 + $0x168] sm:$0xff] }
  0x31   : > { %4952 = vst [vmem:[#allocation18_spill] sm:$0xff] %v4289_v35  ;;  %v289_v40 = vsel %vm256_vm2, %v287_v63, %v288_v0  ;;  %v1657_v56 = vrot.slane %v4271_v53, 1  ;;  %v4307_v54 = vpack.c.bf16 %v1653_v19, %v1651_v1  ;;  %v292_v46 = vrot.slane %v4282_v24, 1 }
  0x32   : > { %v291_v42 = vsel %vm256_vm2, %v288_v0, %v290_v31  ;;  %v293_v17 = vrot.slane %v4285_v25, 1  ;;  %v1656_v57 = vsel %vm256_vm2, %v1654_v20, %v1655_v10  ;;  %v295_v39 = vrot.slane %v4295_v62, 1 }
  0x33   : > { %4953 = vst [vmem:[#allocation19_spill] sm:$0xff] %v4307_v54  ;;  %v4315_v52 = vpack.c.bf16 %v291_v42, %v289_v40  ;;  %v1658_v63 = vsel %vm256_vm2, %v1655_v10, %v1657_v56  ;;  %v1659_v19 = vrot.slane %v4302_v34, 1  ;;  %v1660_v0 = vrot.slane %v4305_v41, 1 }
  0x34   : > { %v4320_v15 = vpack.c.bf16 %v1658_v63, %v1656_v57  ;;  %v1662_v1 = vrot.slane %v4313_v45, 1  ;;  %v294_v40 = vsel %vm256_vm2, %v292_v46, %v293_v17  ;;  %v296_v56 = vsel %vm256_vm2, %v293_v17, %v295_v39 }
  0x35   : > { %4954 = vst [vmem:[#allocation20_spill] sm:$0xff] %v4315_v52  ;;  %3285 = vmatmul.mubr.msk.bf16.gmra.mrb[8].mxu0 %vm323_vm3, %v4289_v35  ;;  %v582_v10 = vrot.slane %v4077_v21, 2  ;;  %v583_v20 = vrot.slane %v4080_v22, 2  ;;  %v585_v31 = vrot.slane %v4083_v23, 2  ;;  %v1420_v42 = vrot.slane %v4089_v28, 2 }
  0x36   : > { %4955 = vst [vmem:[#allocation21_spill] sm:$0xff] %v4320_v15  ;;  %3288 = vmatprep.mubr.msk.bf16.mxu0 %vm323_vm3, %v4315_v52  ;;  %3447 = vmatmul.mubr.msk.bf16.gmra.mrb[8].mxu1 %vm323_vm3, %v4307_v54  ;;  %v1421_v57 = vrot.slane %v4092_v29, 2  ;;  %v1423_v63 = vrot.slane %v4095_v30, 2  ;;  %v1661_v39 = vsel %vm256_vm2, %v1659_v19, %v1660_v0  ;;  %v1663_v46 = vsel %vm256_vm2, %v1660_v0, %v1662_v1 }
  0x37   : > { %3450 = vmatprep.mubr.msk.bf16.mxu1 %vm323_vm3, %v4320_v15  ;;  %v4343_v17 = vpack.c.bf16 %v296_v56, %v294_v40  ;;  %v223_v23 = vpack.c.bf16 %v4052_v8, %v4049_v7  ;;  %v4347_v52 = vpack.c.bf16 %v1663_v46, %v1661_v39  ;;  %v584_v54 = vsel %vm576_vm4, %v582_v10, %v583_v20  ;;  %v2982_v40 = vld [vmem:[%s4905_s1 + $0x6] sm:$0x3] }
  0x38   : > { %v4352_v35 = vpack.c.bf16 %v4066_v14, %v4063_v13  ;;  %v586_v30 = vsel %vm576_vm4, %v583_v20, %v585_v31  ;;  %v1422_v15 = vsel %vm576_vm4, %v1420_v42, %v1421_v57  ;;  %v1424_v19 = vsel %vm576_vm4, %v1421_v57, %v1423_v63 }
  0x39   : > { %v4359_v0 = vpack.c.bf16 %v586_v30, %v584_v54  ;;  %v4361_v1 = vpack.c.bf16 %v1424_v19, %v1422_v15  ;;  %v592_v56 = vrot.slane %v4134_v48, 2  ;;  %v593_v10 = vrot.slane %v4137_v49, 2 }
  0x3a   : > { %v595_v54 = vrot.slane %v4147_v55, 2  ;;  %v1917_v15 = vrot.slane %v4157_v60, 2  ;;  %v4377_v20 = vpack.c.bf16 %v4080_v22, %v4077_v21  ;;  %v4380_v31 = vand.u32 %v2982_v40, %v4036_v4 }
  0x3b   : > { %v594_v42 = vsel %vm576_vm4, %v592_v56, %v593_v10  ;;  %v4385_v57 = vpack.c.bf16 %v4111_v38, %v4100_v33  ;;  %v1918_v39 = vrot.slane %v4160_v61, 2  ;;  %v1920_v55 = vrot.slane %v4168_v2, 2 }
  0x3c   : > { %v596_v63 = vsel %vm576_vm4, %v593_v10, %v595_v54  ;;  %v4392_v46 = vpack.c.bf16 %v4092_v29, %v4089_v28  ;;  %v4396_v21 = vpack.c.bf16 %v4123_v44, %v4120_v43  ;;  %v4400_v22 = vpack.c.bf16 %v4137_v49, %v4134_v48 }
  0x3d   : > { %3289 = vmatmul.mubr.msk.bf16.gmra.mrb[12].mxu0 %vm323_vm3, %v4343_v17  ;;  %v1919_v30 = vsel %vm576_vm4, %v1917_v15, %v1918_v39  ;;  %v1921_v19 = vsel %vm576_vm4, %v1918_v39, %v1920_v55  ;;  %v1922_v2 = vrot.slane %v4187_v18, 2  ;;  %v1923_v40 = vrot.slane %v4197_v26, 2 }
  0x3e   : > { %3294 = vmatprep.mubr.msk.bf16.mxu0 %vm323_vm3, %v223_v23  ;;  %3451 = vmatmul.mubr.msk.bf16.gmra.mrb[12].mxu1 %vm323_vm3, %v4347_v52  ;;  %v4402_v23 = vpack.c.bf16 %v596_v63, %v594_v42  ;;  %v4412_v28 = vpack.c.bf16 %v4160_v61, %v4157_v60  ;;  %v4416_v29 = vpack.c.bf16 %v4174_v5, %v4171_v3  ;;  %v1925_v49 = vrot.slane %v4200_v27, 2 }
  0x3f   : > { %3456 = vmatprep.mubr.msk.bf16.mxu1 %vm323_vm3, %v4352_v35  ;;  %v4418_v48 = vpack.c.bf16 %v1921_v19, %v1919_v30  ;;  %v4426_v56 = vpack.c.bf16 %v4197_v26, %v4187_v18  ;;  %v1924_v60 = vsel %vm576_vm4, %v1922_v2, %v1923_v40  ;;  %v602_v61 = vrot.slane %v4209_v36, 2 }
  0x40   : > { %v603_v10 = vrot.slane %v4212_v37, 2  ;;  %v1926_v27 = vsel %vm576_vm4, %v1923_v40, %v1925_v49  ;;  %v605_v54 = vrot.slane %v4223_v51, 2  ;;  %v1927_v15 = vrot.slane %v4230_v58, 2 }
  0x41   : > { %v1928_v18 = vrot.slane %v4233_v59, 2  ;;  %v4441_v26 = vpack.c.bf16 %v1926_v27, %v1924_v60  ;;  %v1930_v63 = vrot.slane %v4241_v11, 2  ;;  %v607_v39 = vrot.slane %v4244_v12, 2 }
  0x42   : > { %v604_v42 = vsel %vm576_vm4, %v602_v61, %v603_v10  ;;  %v606_v51 = vsel %vm576_vm4, %v603_v10, %v605_v54  ;;  %v608_v30 = vrot.slane %v4247_v16, 2  ;;  %v1932_v40 = vrot.slane %v4260_v32, 2 }
  0x43   : > { %v1929_v55 = vsel %vm576_vm4, %v1927_v15, %v1928_v18  ;;  %v4451_v19 = vpack.c.bf16 %v606_v51, %v604_v42  ;;  %v1931_v2 = vsel %vm576_vm4, %v1928_v18, %v1930_v63  ;;  %v1933_v11 = vrot.slane %v4268_v47, 2 }
  0x44   : > { %v4456_v49 = vpack.c.bf16 %v1931_v2, %v1929_v55  ;;  %v609_v60 = vsel %vm576_vm4, %v607_v39, %v608_v30  ;;  %v1935_v10 = vrot.slane %v4271_v53, 2  ;;  %v612_v54 = vrot.slane %v4282_v24, 2 }
  0x45   : > { %3295 = vmatmul.mubr.msk.bf16.vlgmr.msra.gmra.mrb[0].mxu0 %vm323_vm3, %v4377_v20  ;;  %v613_v15 = vrot.slane %v4285_v25, 2  ;;  %v615_v42 = vrot.slane %v4295_v62, 2  ;;  %v1937_v63 = vrot.slane %v4302_v34, 2  ;;  %v1938_v39 = vrot.slane %v4305_v41, 2 }
  0x46   : > { %3311 = vmatpush3.bf16.msra.mxu0 %v4140_v50  ;;  %3298 = vmatprep.mubr.msk.bf16.mxu0 %vm323_vm3, %v4385_v57  ;;  %v1936_v18 = vsel %vm576_vm4, %v1933_v11, %v1935_v10  ;;  %v1940_v55 = vrot.slane %v4313_v45, 2  ;;  %v4495_v45 = vpack.c.bf16 %v4247_v16, %v4244_v12  ;;  %v580_v10 = vrot.slane %v4055_v9, 2 }
  0x47   : > { %3457 = vmatmul.mubr.msk.bf16.vlgmr.msra.gmra.mrb[0].mxu1 %vm323_vm3, %v4392_v46  ;;  %3328 = vmatprep.subr.bf16.mxu0 %v4380_v31  ;;  %v614_v51 = vsel %vm576_vm4, %v612_v54, %v613_v15  ;;  %v1939_v62 = vsel %vm576_vm4, %v1937_v63, %v1938_v39  ;;  %v1037_v12 = vrot.slane %v4063_v13, 2  ;;  %v4529_v16 = vpack.c.bf16 %v4305_v41, %v4302_v34  ;;  %v4958_v63 = vld [vmem:[#allocation8_spill] sm:$0xff] }
  0x48   : > { %3473 = vmatpush3.bf16.msra.mxu1 %v4140_v50  ;;  %3460 = vmatprep.mubr.msk.bf16.mxu1 %vm323_vm3, %v4396_v21  ;;  %v610_v50 = vrot.slane %v4257_v6, 2  ;;  %v1934_v6 = vsel %vm576_vm4, %v1932_v40, %v1933_v11  ;;  %v1941_v2 = vsel %vm576_vm4, %v1938_v39, %v1940_v55  ;;  %v4489_v40 = vpack.c.bf16 %v4212_v37, %v4209_v36  ;;  %v4956_v37 = vld [vmem:[#allocation5_spill] sm:$0xff] }
  0x49   : > { %3490 = vmatprep.subr.bf16.mxu1 %v4380_v31  ;;  %v4474_v53 = vpack.c.bf16 %v1936_v18, %v1934_v6  ;;  %v4491_v11 = vpack.c.bf16 %v1941_v2, %v1939_v62  ;;  %v4502_v6 = vpack.c.bf16 %v4233_v59, %v4230_v58  ;;  %v4506_v36 = vpack.c.bf16 %v4268_v47, %v4260_v32 }
  0x4a   : > { %v611_v61 = vsel %vm576_vm4, %v608_v30, %v610_v50  ;;  %v616_v30 = vsel %vm576_vm4, %v613_v15, %v615_v42  ;;  %v1040_v54 = vrot.slane %v4956_v37, 2  ;;  %v4523_v58 = vpack.c.bf16 %v4285_v25, %v4282_v24  ;;  %v4957_v15 = vld [vmem:[#allocation7_spill] sm:$0xff]  ;;  %v218_v37 = vld [vmem:[%s4046_s5 + $0x188] sm:$0xff] }
  0x4b   : > { %v4461_v27 = vpack.c.bf16 %v611_v61, %v609_v60  ;;  %v4484_v50 = vpack.c.bf16 %v616_v30, %v614_v51  ;;  %v577_v60 = vrot.slane %v4049_v7, 2  ;;  %v578_v61 = vrot.slane %v4052_v8, 2  ;;  %v4959_v30 = vld [vmem:[#allocation12_spill] sm:$0xff] }
  0x4c   : > { %v1038_v7 = vrot.slane %v4066_v14, 2  ;;  %v587_v32 = vrot.slane %v4100_v33, 2  ;;  %v588_v47 = vrot.slane %v4111_v38, 2  ;;  %v590_v18 = vrot.slane %v4957_v15, 2  ;;  %v4967_v15 = vld [vmem:[#allocation18_spill] sm:$0xff] }
  0x4d   : > { %3299 = vmatmul.mubr.msk.bf16.gmra.mrb[4].mxu0 %vm323_vm3, %v4400_v22  ;;  %v579_v8 = vsel %vm576_vm4, %v577_v60, %v578_v61  ;;  %v581_v9 = vsel %vm576_vm4, %v578_v61, %v580_v10  ;;  %v1912_v24 = vrot.slane %v4120_v43, 2  ;;  %v1913_v25 = vrot.slane %v4123_v44, 2  ;;  %v2991_v43 = vld [vmem:[%s4905_s1 + $0x8] sm:$0x3] }
  0x4e   : > { %3302 = vmatprep.mubr.msk.bf16.mxu0 %vm323_vm3, %v4416_v29  ;;  %v1039_v13 = vsel %vm576_vm4, %v1037_v12, %v1038_v7  ;;  %v1041_v14 = vsel %vm576_vm4, %v1038_v7, %v1040_v54  ;;  %v633_v59 = vpack.c.bf16 %v581_v9, %v579_v8  ;;  %v1915_v39 = vrot.slane %v4958_v63, 2  ;;  %v4960_v12 = vld [vmem:[#allocation9_spill] sm:$0xff]  ;;  %v4961_v7 = vld [vmem:[#allocation10_spill] sm:$0xff] }
  0x4f   : > { %3461 = vmatmul.mubr.msk.bf16.gmra.mrb[4].mxu1 %vm323_vm3, %v4412_v28  ;;  %v4534_v42 = vpack.c.bf16 %v1041_v14, %v1039_v13  ;;  %v589_v33 = vsel %vm576_vm4, %v587_v32, %v588_v47  ;;  %v591_v38 = vsel %vm576_vm4, %v588_v47, %v590_v18  ;;  %v1914_v44 = vsel %vm576_vm4, %v1912_v24, %v1913_v25  ;;  %v3009_v8 = vld [vmem:[%s4905_s1 + $0xc] sm:$0x3]  ;;  %v4962_v13 = vld [vmem:[#allocation11_spill] sm:$0xff]  ;;  %v4966_v47 = vld [vmem:[#allocation16_spill] sm:$0xff] }
  0x50   : > { %3464 = vmatprep.mubr.msk.bf16.mxu1 %vm323_vm3, %v4426_v56  ;;  %v1916_v34 = vsel %vm576_vm4, %v1913_v25, %v1915_v39  ;;  %v4553_v41 = vpack.c.bf16 %v591_v38, %v589_v33  ;;  %v597_v51 = vrot.slane %v4171_v3, 2  ;;  %v598_v55 = vrot.slane %v4174_v5, 2  ;;  %v4963_v14 = vld [vmem:[#allocation14_spill] sm:$0xff]  ;;  %v4965_v32 = vld [vmem:[#allocation15_spill] sm:$0xff]  ;;  %v4968_v18 = vld [vmem:[#allocation17_spill] sm:$0xff] }
  0x51   : > { %v600_v62 = vrot.slane %v4959_v30, 2  ;;  %v922_v2 = vand.u32 %v2991_v43, %v4036_v4  ;;  %v4559_v60 = vpack.c.bf16 %v1916_v34, %v1914_v44  ;;  %v1173_v9 = vand.u32 %v3009_v8, %v4036_v4  ;;  %v4969_v24 = vld [vmem:[#allocation19_spill] sm:$0xff]  ;;  %v219_v25 = vld [vmem:[%s4046_s5 + $0x190] sm:$0x3]  ;;  %v4970_v38 = vld [vmem:[#allocation20_spill] sm:$0xff] }
  0x52   : > { %v599_v3 = vsel %vm576_vm4, %v597_v51, %v598_v55  ;;  %v2212_v39 = vrot.slane %v218_v37, 1  ;;  %v2214_v33 = vrot.slane %v219_v25, 1  ;;  %v4971_v43 = vld [vmem:[#allocation21_spill] sm:$0xff]  ;;  %v3018_v30 = vld [vmem:[%s4905_s1 + $0xe] sm:$0x3] }
  0x53   : > { %v601_v5 = vsel %vm576_vm4, %v598_v55, %v600_v62  ;;  %v4972_v55 = vld [vmem:[#allocation6_spill] sm:$0xff]  ;;  %v1305_v62 = vand.u32 %v3018_v30, %v4036_v4 }
  0x54   : > { %v4573_v61 = vpack.c.bf16 %v601_v5, %v599_v3  ;;  %v2215_v34 = vsel %vm256_vm2, %v2212_v39, %v2214_v33  ;;  %v2338_v3 = vrot.slane %v219_v25, 2 }
  0x55   : > { %3303 = vmatmul.mubr.msk.bf16.gmra.mrb[8].mxu0 %vm323_vm3, %v4489_v40 }
  0x56   : > { %3306 = vmatprep.mubr.msk.bf16.mxu0 %vm323_vm3, %v4495_v45 }
  0x57   : > { %3465 = vmatmul.mubr.msk.bf16.gmra.mrb[8].mxu1 %vm323_vm3, %v4502_v6 }
  0x58   : > { %3468 = vmatprep.mubr.msk.bf16.mxu1 %vm323_vm3, %v4506_v36 }
  0x5d   : > { %3307 = vmatmul.mubr.msk.bf16.gmra.mrb[12].mxu0 %vm323_vm3, %v4523_v58 }
  0x5e   : > { %3312 = vmatprep.mubr.msk.bf16.mxu0 %vm323_vm3, %v633_v59  ;;  %v4964_v59 = vld [vmem:[#allocation13_spill] sm:$0xff] }
  0x5f   : > { %3469 = vmatmul.mubr.msk.bf16.gmra.mrb[12].mxu1 %vm323_vm3, %v4529_v16 }
  0x60   : > { %3474 = vmatprep.mubr.msk.bf16.mxu1 %vm323_vm3, %v4534_v42 }
  0x65   : > { %3313 = vmatmul.mubr.msk.bf16.vlgmr.msra.gmra.mrb[0].mxu0 %vm323_vm3, %v4359_v0 }
  0x66   : > { %3329 = vmatpush3.bf16.msra.mxu0 %v4380_v31  ;;  %3316 = vmatprep.mubr.msk.bf16.mxu0 %vm323_vm3, %v4553_v41 }
  0x67   : > { %3475 = vmatmul.mubr.msk.bf16.vlgmr.msra.gmra.mrb[0].mxu1 %vm323_vm3, %v4361_v1  ;;  %3346 = vmatprep.subr.bf16.mxu0 %v922_v2 }
  0x68   : > { %3491 = vmatpush3.bf16.msra.mxu1 %v4380_v31  ;;  %3478 = vmatprep.mubr.msk.bf16.mxu1 %vm323_vm3, %v4559_v60  ;;  %v3000_v31 = vld [vmem:[%s4905_s1 + $0xa] sm:$0x3] }
  0x69   : > { %3508 = vmatprep.subr.bf16.mxu1 %v922_v2  ;;  %v1051_v10 = vand.u32 %v3000_v31, %v4036_v4 }
  0x6d   : > { %3317 = vmatmul.mubr.msk.bf16.gmra.mrb[4].mxu0 %vm323_vm3, %v4402_v23 }
  0x6e   : > { %3320 = vmatprep.mubr.msk.bf16.mxu0 %vm323_vm3, %v4573_v61 }
  0x6f   : > { %3479 = vmatmul.mubr.msk.bf16.gmra.mrb[4].mxu1 %vm323_vm3, %v4418_v48 }
  0x70   : > { %3482 = vmatprep.mubr.msk.bf16.mxu1 %vm323_vm3, %v4441_v26 }
  0x75   : > { %3321 = vmatmul.mubr.msk.bf16.gmra.mrb[8].mxu0 %vm323_vm3, %v4451_v19 }
  0x76   : > { %3324 = vmatprep.mubr.msk.bf16.mxu0 %vm323_vm3, %v4461_v27 }
  0x77   : > { %3483 = vmatmul.mubr.msk.bf16.gmra.mrb[8].mxu1 %vm323_vm3, %v4456_v49 }
  0x78   : > { %3486 = vmatprep.mubr.msk.bf16.mxu1 %vm323_vm3, %v4474_v53 }
  0x7d   : > { %3325 = vmatmul.mubr.msk.bf16.gmra.mrb[12].mxu0 %vm323_vm3, %v4484_v50 }
  0x7e   : > { %3330 = vmatprep.mubr.msk.bf16.mxu0 %vm323_vm3, %v4377_v20  ;;  %v217_v20 = vld [vmem:[%s4046_s5 + $0x180] sm:$0xff] }
  0x7f   : > { %3487 = vmatmul.mubr.msk.bf16.gmra.mrb[12].mxu1 %vm323_vm3, %v4491_v11  ;;  %v4629_v54 = vpack.c.bf16 %v218_v37, %v217_v20  ;;  %v2211_v63 = vrot.slane %v217_v20, 1 }
  0x80   : > { %3492 = vmatprep.mubr.msk.bf16.mxu1 %vm323_vm3, %v4392_v46 }
  0x81   : > { %v2213_v44 = vsel %vm256_vm2, %v2211_v63, %v2212_v39 }
  0x82   : > { %v4670_v51 = vpack.c.bf16 %v2215_v34, %v2213_v44 }
  0x85   : > { %3331 = vmatmul.mubr.msk.bf16.vlgmr.msra.gmra.mrb[0].mxu0 %vm323_vm3, %v4385_v57 }
  0x86   : > { %3347 = vmatpush3.bf16.msra.mxu0 %v922_v2  ;;  %3334 = vmatprep.mubr.msk.bf16.mxu0 %vm323_vm3, %v4400_v22 }
  0x87   : > { %3493 = vmatmul.mubr.msk.bf16.vlgmr.msra.gmra.mrb[0].mxu1 %vm323_vm3, %v4396_v21  ;;  %3364 = vmatprep.subr.bf16.mxu0 %v1051_v10 }
  0x88   : > { %3509 = vmatpush3.bf16.msra.mxu1 %v922_v2  ;;  %3496 = vmatprep.mubr.msk.bf16.mxu1 %vm323_vm3, %v4412_v28  ;;  %v2336_v2 = vrot.slane %v218_v37, 2 }
  0x89   : > { %3526 = vmatprep.subr.bf16.mxu1 %v1051_v10 }
  0x8a   : > { %v2339_v31 = vsel %vm576_vm4, %v2336_v2, %v2338_v3 }
  0x8d   : > { %3335 = vmatmul.mubr.msk.bf16.gmra.mrb[4].mxu0 %vm323_vm3, %v4416_v29 }
  0x8e   : > { %3338 = vmatprep.mubr.msk.bf16.mxu0 %vm323_vm3, %v4489_v40 }
  0x8f   : > { %3497 = vmatmul.mubr.msk.bf16.gmra.mrb[4].mxu1 %vm323_vm3, %v4426_v56 }
  0x90   : > { %3500 = vmatprep.mubr.msk.bf16.mxu1 %vm323_vm3, %v4502_v6 }
  0x95   : > { %3339 = vmatmul.mubr.msk.bf16.gmra.mrb[8].mxu0 %vm323_vm3, %v4495_v45 }
  0x96   : > { %3342 = vmatprep.mubr.msk.bf16.mxu0 %vm323_vm3, %v4523_v58 }
  0x97   : > { %3501 = vmatmul.mubr.msk.bf16.gmra.mrb[8].mxu1 %vm323_vm3, %v4506_v36 }
  0x98   : > { %3504 = vmatprep.mubr.msk.bf16.mxu1 %vm323_vm3, %v4529_v16 }
  0x9d   : > { %3343 = vmatmul.mubr.msk.bf16.gmra.mrb[12].mxu0 %vm323_vm3, %v4352_v35 }
  0x9e   : > { %3348 = vmatprep.mubr.msk.bf16.mxu0 %vm323_vm3, %v4960_v12 }
  0x9f   : > { %3505 = vmatmul.mubr.msk.bf16.gmra.mrb[12].mxu1 %vm323_vm3, %v4629_v54 }
  0xa0   : > { %3510 = vmatprep.mubr.msk.bf16.mxu1 %vm323_vm3, %v4961_v7 }
  0xa5   : > { %3349 = vmatmul.mubr.msk.bf16.vlgmr.msra.gmra.mrb[0].mxu0 %vm323_vm3, %v4962_v13 }
  0xa6   : > { %3365 = vmatpush3.bf16.msra.mxu0 %v1051_v10  ;;  %3352 = vmatprep.mubr.msk.bf16.mxu0 %vm323_vm3, %v4963_v14 }
  0xa7   : > { %3511 = vmatmul.mubr.msk.bf16.vlgmr.msra.gmra.mrb[0].mxu1 %vm323_vm3, %v4964_v59  ;;  %3382 = vmatprep.subr.bf16.mxu0 %v1173_v9 }
  0xa8   : > { %3527 = vmatpush3.bf16.msra.mxu1 %v1051_v10  ;;  %3514 = vmatprep.mubr.msk.bf16.mxu1 %vm323_vm3, %v4965_v32 }
  0xa9   : > { %3544 = vmatprep.subr.bf16.mxu1 %v1173_v9 }
  0xad   : > { %3353 = vmatmul.mubr.msk.bf16.gmra.mrb[4].mxu0 %vm323_vm3, %v4966_v47 }
  0xae   : > { %3356 = vmatprep.mubr.msk.bf16.mxu0 %vm323_vm3, %v4967_v15 }
  0xaf   : > { %3515 = vmatmul.mubr.msk.bf16.gmra.mrb[4].mxu1 %vm323_vm3, %v4968_v18 }
  0xb0   : > { %3518 = vmatprep.mubr.msk.bf16.mxu1 %vm323_vm3, %v4969_v24 }
  0xb5   : > { %3357 = vmatmul.mubr.msk.bf16.gmra.mrb[8].mxu0 %vm323_vm3, %v4970_v38 }
  0xb6   : > { %3360 = vmatprep.mubr.msk.bf16.mxu0 %vm323_vm3, %v4343_v17 }
  0xb7   : > { %3519 = vmatmul.mubr.msk.bf16.gmra.mrb[8].mxu1 %vm323_vm3, %v4971_v43 }
  0xb8   : > { %3522 = vmatprep.mubr.msk.bf16.mxu1 %vm323_vm3, %v4347_v52 }
  0xbd   : > { %3361 = vmatmul.mubr.msk.bf16.gmra.mrb[12].mxu0 %vm323_vm3, %v4972_v55 }
  0xbe   : > { %3366 = vmatprep.mubr.msk.bf16.mxu0 %vm323_vm3, %v4359_v0  ;;  %v2335_v0 = vrot.slane %v217_v20, 2  ;;  %v3027_v20 = vld [vmem:[%s4905_s1 + $0x10] sm:$0x3] }
  0xbf   : > { %3523 = vmatmul.mubr.msk.bf16.gmra.mrb[12].mxu1 %vm323_vm3, %v4670_v51  ;;  %v1434_v37 = vand.u32 %v3027_v20, %v4036_v4  ;;  %v220_v4 = vld [vmem:[%s4046_s5 + $0x198] sm:$0xff] }
  0xc0   : > { %3528 = vmatprep.mubr.msk.bf16.mxu1 %vm323_vm3, %v4361_v1  ;;  %v2337_v5 = vsel %vm576_vm4, %v2335_v0, %v2336_v2 }
  0xc1   : > { %v4710_v10 = vpack.c.bf16 %v2339_v31, %v2337_v5 }
  0xc5   : > { %3367 = vmatmul.mubr.msk.bf16.vlgmr.msra.gmra.mrb[0].mxu0 %vm323_vm3, %v4553_v41 }
  0xc6   : > { %3383 = vmatpush3.bf16.msra.mxu0 %v1173_v9  ;;  %3370 = vmatprep.mubr.msk.bf16.mxu0 %vm323_vm3, %v4402_v23 }
  0xc7   : > { %3529 = vmatmul.mubr.msk.bf16.vlgmr.msra.gmra.mrb[0].mxu1 %vm323_vm3, %v4559_v60  ;;  %3400 = vmatprep.subr.bf16.mxu0 %v1305_v62 }
  0xc8   : > { %3545 = vmatpush3.bf16.msra.mxu1 %v1173_v9  ;;  %3532 = vmatprep.mubr.msk.bf16.mxu1 %vm323_vm3, %v4418_v48 }
  0xc9   : > { %3562 = vmatprep.subr.bf16.mxu1 %v1305_v62 }
  0xcd   : > { %3371 = vmatmul.mubr.msk.bf16.gmra.mrb[4].mxu0 %vm323_vm3, %v4573_v61 }
  0xce   : > { %3374 = vmatprep.mubr.msk.bf16.mxu0 %vm323_vm3, %v4451_v19 }
  0xcf   : > { %3533 = vmatmul.mubr.msk.bf16.gmra.mrb[4].mxu1 %vm323_vm3, %v4441_v26 }
  0xd0   : > { %3536 = vmatprep.mubr.msk.bf16.mxu1 %vm323_vm3, %v4456_v49 }
  0xd5   : > { %3375 = vmatmul.mubr.msk.bf16.gmra.mrb[8].mxu0 %vm323_vm3, %v4461_v27 }
  0xd6   : > { %3378 = vmatprep.mubr.msk.bf16.mxu0 %vm323_vm3, %v4484_v50 }
  0xd7   : > { %3537 = vmatmul.mubr.msk.bf16.gmra.mrb[8].mxu1 %vm323_vm3, %v4474_v53 }
  0xd8   : > { %3540 = vmatprep.mubr.msk.bf16.mxu1 %vm323_vm3, %v4491_v11 }
  0xdd   : > { %3379 = vmatmul.mubr.msk.bf16.gmra.mrb[12].mxu0 %vm323_vm3, %v4534_v42 }
  0xde   : > { %3384 = vmatprep.mubr.msk.bf16.mxu0 %vm323_vm3, %v4385_v57  ;;  %v221_v57 = vld [vmem:[%s4046_s5 + $0x1a0] sm:$0xff] }
  0xdf   : > { %3541 = vmatmul.mubr.msk.bf16.gmra.mrb[12].mxu1 %vm323_vm3, %v4710_v10 }
  0xe0   : > { %3546 = vmatprep.mubr.msk.bf16.mxu1 %vm323_vm3, %v4396_v21  ;;  %v2459_v21 = vpack.c.bf16 %v221_v57, %v220_v4 }
  0xe5   : > { %3385 = vmatmul.mubr.msk.bf16.vlgmr.msra.gmra.mrb[0].mxu0 %vm323_vm3, %v4400_v22  ;;  %v2580_v22 = vrot.slane %v221_v57, 1 }
  0xe6   : > { %3401 = vmatpush3.bf16.msra.mxu0 %v1305_v62  ;;  %3388 = vmatprep.mubr.msk.bf16.mxu0 %vm323_vm3, %v4416_v29 }
  0xe7   : > { %3547 = vmatmul.mubr.msk.bf16.vlgmr.msra.gmra.mrb[0].mxu1 %vm323_vm3, %v4412_v28  ;;  %3418 = vmatprep.subr.bf16.mxu0 %v1434_v37 }
  0xe8   : > { %3563 = vmatpush3.bf16.msra.mxu1 %v1305_v62  ;;  %3550 = vmatprep.mubr.msk.bf16.mxu1 %vm323_vm3, %v4426_v56 }
  0xe9   : > { %3580 = vmatprep.subr.bf16.mxu1 %v1434_v37 }
  0xed   : > { %3389 = vmatmul.mubr.msk.bf16.gmra.mrb[4].mxu0 %vm323_vm3, %v4489_v40 }
  0xee   : > { %3392 = vmatprep.mubr.msk.bf16.mxu0 %vm323_vm3, %v4495_v45 }
  0xef   : > { %3551 = vmatmul.mubr.msk.bf16.gmra.mrb[4].mxu1 %vm323_vm3, %v4502_v6 }
  0xf0   : > { %3554 = vmatprep.mubr.msk.bf16.mxu1 %vm323_vm3, %v4506_v36 }
  0xf5   : > { %3393 = vmatmul.mubr.msk.bf16.gmra.mrb[8].mxu0 %vm323_vm3, %v4523_v58 }
  0xf6   : > { %3396 = vmatprep.mubr.msk.bf16.mxu0 %vm323_vm3, %v4352_v35  ;;  %v222_v35 = vld [vmem:[%s4046_s5 + $0x1a8] sm:$0x3]  ;;  %s3109_s5 = sshll.u32 %s4002_s16, 4  ;;  %s3960_s16 = smov [#allocation2]  }
  0xf7   : > { %3555 = vmatmul.mubr.msk.bf16.gmra.mrb[8].mxu1 %vm323_vm3, %v4529_v16  ;;  %v2582_v28 = vrot.slane %v222_v35, 1  ;;  %s4862_s10 = scalar_lea.hbm %s4907_s3, %s3109_s5  ;;  %s3899_s19 = sshll.u32 %s3960_s16, 4  ;;  %s3900_s19 = int_to_ptr.vmem [resolvable:$false] %s3899_s19 }
  0xf8   : > { %3558 = vmatprep.mubr.msk.bf16.mxu1 %vm323_vm3, %v4629_v54  ;;  %s3901_s20 = scalar_lea.vmem %s3900_s19, 32  ;;  %p3902_p0 = scmp.lt.s32.totalorder %s4864_s7, %s3900_s19 }
  0xf9   : > { %v2583_v56 = vsel %vm256_vm2, %v2580_v22, %v2582_v28  ;;  %p3903_p1 = scmp.lt.s32.totalorder %s3901_s20, %s3895_s17 }
  0xfb   : > { %p3904_p2 = por %p3903_p1, %p3902_p0 }
  0xfd   : > { %3397 = vmatmul.mubr.msk.bf16.gmra.mrb[12].mxu0 %vm323_vm3, %v4392_v46  ;;  %v2579_v46 = vrot.slane %v220_v4, 1  ;;  %p3905_p3 = pnand %p3904_p2, %p3898_p13 }
  0xfe   : > { %3402 = vmatprep.mubr.msk.bf16.mxu0 %vm323_vm3, %v4962_v13 }
  0xff   : > { %3559 = vmatmul.mubr.msk.bf16.gmra.mrb[12].mxu1 %vm323_vm3, %v2459_v21  ;;  %v2581_v29 = vsel %vm256_vm2, %v2579_v46, %v2580_v22 }
 0x100   : > { %3564 = vmatprep.mubr.msk.bf16.mxu1 %vm323_vm3, %v4964_v59  ;;  %v2586_v40 = vpack.c.bf16 %v2583_v56, %v2581_v29 }
 0x105   : > { %3403 = vmatmul.mubr.msk.bf16.vlgmr.msra.gmra.mrb[0].mxu0 %vm323_vm3, %v4963_v14 }
 0x106   : > { %3419 = vmatpush3.bf16.msra.mxu0 %v1434_v37  ;;  %3406 = vmatprep.mubr.msk.bf16.mxu0 %vm323_vm3, %v4966_v47 }
 0x107   : > { %3565 = vmatmul.mubr.msk.bf16.vlgmr.msra.gmra.mrb[0].mxu1 %vm323_vm3, %v4965_v32 }
 0x108   : > { %3581 = vmatpush3.bf16.msra.mxu1 %v1434_v37  ;;  %3568 = vmatprep.mubr.msk.bf16.mxu1 %vm323_vm3, %v4968_v18 }
 0x10d   : > { %3407 = vmatmul.mubr.msk.bf16.gmra.mrb[4].mxu0 %vm323_vm3, %v4967_v15 }
 0x10e   : > { %3410 = vmatprep.mubr.msk.bf16.mxu0 %vm323_vm3, %v4970_v38 }
 0x10f   : > { %3569 = vmatmul.mubr.msk.bf16.gmra.mrb[4].mxu1 %vm323_vm3, %v4969_v24 }
 0x110   : > { %3572 = vmatprep.mubr.msk.bf16.mxu1 %vm323_vm3, %v4971_v43 }
 0x115   : > { %3411 = vmatmul.mubr.msk.bf16.gmra.mrb[8].mxu0 %vm323_vm3, %v4343_v17  ;;  %v2704_v17 = vrot.slane %v221_v57, 2 }
 0x116   : > { %3414 = vmatprep.mubr.msk.bf16.mxu0 %vm323_vm3, %v4972_v55 }
 0x117   : > { %3573 = vmatmul.mubr.msk.bf16.gmra.mrb[8].mxu1 %vm323_vm3, %v4347_v52  ;;  %v2703_v52 = vrot.slane %v220_v4, 2 }
 0x118   : > { %3576 = vmatprep.mubr.msk.bf16.mxu1 %vm323_vm3, %v4670_v51 }
 0x11d   : > { %3415 = vmatmul.mubr.msk.bf16.gmra.mrb[12].mxu0 %vm323_vm3, %v4961_v7 }
 0x11e   : > { %3420 = vmatprep.mubr.msk.bf16.mxu0 %vm323_vm3, %v4553_v41 }
 0x11f   : > { %3577 = vmatmul.mubr.msk.bf16.gmra.mrb[12].mxu1 %vm323_vm3, %v2586_v40 }
 0x120   : > { %3582 = vmatprep.mubr.msk.bf16.mxu1 %vm323_vm3, %v4559_v60 }
 0x125   : > { %3421 = vmatmul.mubr.msk.bf16.vlgmr.msra.gmra.mrb[0].mxu0 %vm323_vm3, %v4402_v23  ;;  %v2706_v23 = vrot.slane %v222_v35, 2 }
 0x126   : > { %3424 = vmatprep.mubr.msk.bf16.mxu0 %vm323_vm3, %v4573_v61 }
 0x127   : > { %3583 = vmatmul.mubr.msk.bf16.vlgmr.msra.gmra.mrb[0].mxu1 %vm323_vm3, %v4418_v48  ;;  %v2705_v48 = vsel %vm576_vm4, %v2703_v52, %v2704_v17 }
 0x128   : > { %3586 = vmatprep.mubr.msk.bf16.mxu1 %vm323_vm3, %v4441_v26  ;;  %v2707_v26 = vsel %vm576_vm4, %v2704_v17, %v2706_v23 }
 0x12d   : > { %3425 = vmatmul.mubr.msk.bf16.gmra.mrb[4].mxu0 %vm323_vm3, %v4451_v19  ;;  %v2710_v19 = vpack.c.bf16 %v2707_v26, %v2705_v48 }
 0x12e   : > { %3428 = vmatprep.mubr.msk.bf16.mxu0 %vm323_vm3, %v4461_v27 }
 0x12f   : > { %3587 = vmatmul.mubr.msk.bf16.gmra.mrb[4].mxu1 %vm323_vm3, %v4456_v49  ;;  %v4823_v49 = vld [vmem:[%s4906_s2] ss:$0 sm:$0xff] }
 0x130   : > { %3590 = vmatprep.mubr.msk.bf16.mxu1 %vm323_vm3, %v4474_v53 }
 0x135   : > { %3429 = vmatmul.mubr.msk.bf16.gmra.mrb[8].mxu0 %vm323_vm3, %v4484_v50 }
 0x136   : > { %3432 = vmatprep.mubr.msk.bf16.mxu0 %vm323_vm3, %v4534_v42 }
 0x137   : > { %3591 = vmatmul.mubr.msk.bf16.gmra.mrb[8].mxu1 %vm323_vm3, %v4491_v11 }
 0x138   : > { %3594 = vmatprep.mubr.msk.bf16.mxu1 %vm323_vm3, %v4710_v10 }
 0x13d   : > { %3433 = vmatmul.mubr.msk.bf16.gmra.mrb[12].mxu0 %vm323_vm3, %v4361_v1 }
 0x13f   : > { %3595 = vmatmul.mubr.msk.bf16.gmra.mrb[12].mxu1 %vm323_vm3, %v2710_v19 }
 0x1f8   : > { %v3422_v27 = vpop.f32.mrb[0].mxu0 }
 0x1f9   : > { %v1470_v53 = vpop.f32.mrb[1].mxu0  ;;  %v1558_v58 = vadd.f32 %v3422_v27, %v4823_v49 }
 0x1fa   : > { %v3584_v50 = vpop.f32.mrb[0].mxu1  ;;  %v1556_v11 = vadd.f32 %v4823_v49, %v1470_v53  ;;  %v3423_v45 = vpop.f32.mrb[2].mxu0 }
 0x1fb   : > { %v2748_v6 = vpop.f32.mrb[1].mxu1  ;;  %v1473_v36 = vpop.f32.mrb[3].mxu0  ;;  %v2829_v41 = vadd.f32 %v3584_v50, %v4823_v49  ;;  %v1559_v54 = vadd.f32 %v3423_v45, %v4823_v49  ;;  %v1574_v9 = vmax.f32 %v1558_v58, 0.0 }
 0x1fc   : > { %v2827_v16 = vadd.f32 %v4823_v49, %v2748_v6  ;;  %v3585_v1 = vpop.f32.mrb[2].mxu1  ;;  %v1557_v42 = vadd.f32 %v4823_v49, %v1473_v36  ;;  %v1572_v61 = vmax.f32 %v1556_v11, 0.0 }
 0x1fd   : > { %v2751_v60 = vpop.f32.mrb[3].mxu1  ;;  %v2830_v8 = vadd.f32 %v3585_v1, %v4823_v49  ;;  %v2845_v47 = vmax.f32 %v2829_v41, 0.0  ;;  %v1575_v18 = vmax.f32 %v1559_v54, 0.0 }
 0x1fe   : > { %v1573_v12 = vmax.f32 %v1557_v42, 0.0  ;;  %v2828_v7 = vadd.f32 %v4823_v49, %v2751_v60  ;;  %v2843_v13 = vmax.f32 %v2827_v16, 0.0 }
 0x1ff   : > { %v2846_v38 = vmax.f32 %v2830_v8, 0.0 }
 0x200   : > { %v1588_v14 = vadd.f32 %v1573_v12, %v1572_v61  ;;  %v2844_v59 = vmax.f32 %v2828_v7, 0.0  ;;  %v3426_v32 = vpop.f32.mrb[4].mxu0 }
 0x201   : > { %v1486_v15 = vpop.f32.mrb[5].mxu0  ;;  %v1562_v0 = vadd.f32 %v3426_v32, %v4823_v49 }
 0x202   : > { %v1589_v24 = vadd.f32 %v1588_v14, %v1574_v9  ;;  %v2859_v25 = vadd.f32 %v2844_v59, %v2843_v13  ;;  %v3588_v63 = vpop.f32.mrb[4].mxu1  ;;  %v1560_v39 = vadd.f32 %v4823_v49, %v1486_v15  ;;  %v3427_v33 = vpop.f32.mrb[6].mxu0 }
 0x203   : > { %v2764_v43 = vpop.f32.mrb[5].mxu1  ;;  %v1489_v44 = vpop.f32.mrb[7].mxu0  ;;  %v2833_v2 = vadd.f32 %v3588_v63, %v4823_v49  ;;  %v1563_v4 = vadd.f32 %v3427_v33, %v4823_v49  ;;  %v1578_v28 = vmax.f32 %v1562_v0, 0.0 }
 0x204   : > { %v2860_v34 = vadd.f32 %v2859_v25, %v2845_v47  ;;  %v1576_v51 = vmax.f32 %v1560_v39, 0.0  ;;  %v1590_v55 = vadd.f32 %v1589_v24, %v1575_v18  ;;  %v2831_v30 = vadd.f32 %v4823_v49, %v2764_v43  ;;  %v3589_v62 = vpop.f32.mrb[6].mxu1 }
 0x205   : > { %v1561_v3 = vadd.f32 %v4823_v49, %v1489_v44  ;;  %v2767_v5 = vpop.f32.mrb[7].mxu1  ;;  %v2834_v57 = vadd.f32 %v3589_v62, %v4823_v49  ;;  %v2849_v40 = vmax.f32 %v2833_v2, 0.0  ;;  %v1579_v26 = vmax.f32 %v1563_v4, 0.0 }
 0x206   : > { %v1591_v31 = vadd.f32 %v1590_v55, %v1576_v51  ;;  %v2847_v10 = vmax.f32 %v2831_v30, 0.0  ;;  %v2861_v20 = vadd.f32 %v2860_v34, %v2846_v38  ;;  %v2832_v37 = vadd.f32 %v4823_v49, %v2767_v5 }
 0x207   : > { %v1577_v21 = vmax.f32 %v1561_v3, 0.0  ;;  %v2850_v19 = vmax.f32 %v2834_v57, 0.0 }
 0x208   : > { %v2862_v35 = vadd.f32 %v2861_v20, %v2847_v10  ;;  %v2848_v46 = vmax.f32 %v2832_v37, 0.0  ;;  %v3430_v22 = vpop.f32.mrb[8].mxu0 }
 0x209   : > { %v1592_v29 = vadd.f32 %v1591_v31, %v1577_v21  ;;  %v1502_v56 = vpop.f32.mrb[9].mxu0  ;;  %v1566_v16 = vadd.f32 %v3430_v22, %v4823_v49 }
 0x20a   : > { %v2863_v52 = vadd.f32 %v2862_v35, %v2848_v46  ;;  %v3592_v17 = vpop.f32.mrb[8].mxu1  ;;  %v1564_v23 = vadd.f32 %v4823_v49, %v1502_v56  ;;  %v3431_v48 = vpop.f32.mrb[10].mxu0 }
 0x20b   : > { %v1593_v27 = vadd.f32 %v1592_v29, %v1578_v28  ;;  %v2780_v53 = vpop.f32.mrb[9].mxu1  ;;  %v1505_v50 = vpop.f32.mrb[11].mxu0  ;;  %v2837_v1 = vadd.f32 %v3592_v17, %v4823_v49  ;;  %v1567_v8 = vadd.f32 %v3431_v48, %v4823_v49  ;;  %v1582_v32 = vmax.f32 %v1566_v16, 0.0 }
 0x20c   : > { %v2864_v11 = vadd.f32 %v2863_v52, %v2849_v40  ;;  %v1580_v45 = vmax.f32 %v1564_v23, 0.0  ;;  %v2835_v6 = vadd.f32 %v4823_v49, %v2780_v53  ;;  %v3593_v36 = vpop.f32.mrb[10].mxu1  ;;  %v1565_v58 = vadd.f32 %v4823_v49, %v1505_v50 }
 0x20d   : > { %v1594_v42 = vadd.f32 %v1593_v27, %v1579_v26  ;;  %v2783_v41 = vpop.f32.mrb[11].mxu1  ;;  %v2838_v9 = vadd.f32 %v3593_v36, %v4823_v49  ;;  %v2853_v18 = vmax.f32 %v2837_v1, 0.0  ;;  %v1583_v33 = vmax.f32 %v1567_v8, 0.0 }
 0x20e   : > { %v2851_v60 = vmax.f32 %v2835_v6, 0.0  ;;  %v2865_v61 = vadd.f32 %v2864_v11, %v2850_v19  ;;  %v1581_v54 = vmax.f32 %v1565_v58, 0.0  ;;  %v2836_v12 = vadd.f32 %v4823_v49, %v2783_v41 }
 0x20f   : > { %v1595_v7 = vadd.f32 %v1594_v42, %v1580_v45  ;;  %v2854_v38 = vmax.f32 %v2838_v9, 0.0 }
 0x210   : > { %v2866_v13 = vadd.f32 %v2865_v61, %v2851_v60  ;;  %v2852_v14 = vmax.f32 %v2836_v12, 0.0  ;;  %v3434_v59 = vpop.f32.mrb[12].mxu0 }
 0x211   : > { %v1596_v47 = vadd.f32 %v1595_v7, %v1581_v54  ;;  %v1518_v15 = vpop.f32.mrb[13].mxu0  ;;  %v1570_v2 = vadd.f32 %v3434_v59, %v4823_v49 }
 0x212   : > { %v2867_v24 = vadd.f32 %v2866_v13, %v2852_v14  ;;  %v3596_v25 = vpop.f32.mrb[12].mxu1  ;;  %v1568_v63 = vadd.f32 %v4823_v49, %v1518_v15  ;;  %v3435_v39 = vpop.f32.mrb[14].mxu0 }
 0x213   : > { %v1597_v43 = vadd.f32 %v1596_v47, %v1582_v32  ;;  %v2796_v44 = vpop.f32.mrb[13].mxu1  ;;  %v1521_v34 = vpop.f32.mrb[15].mxu0  ;;  %v2841_v3 = vadd.f32 %v3596_v25, %v4823_v49  ;;  %v1571_v21 = vadd.f32 %v3435_v39, %v4823_v49  ;;  %v1586_v28 = vmax.f32 %v1570_v2, 0.0 }
 0x214   : > { %v2868_v51 = vadd.f32 %v2867_v24, %v2853_v18  ;;  %v1584_v55 = vmax.f32 %v1568_v63, 0.0  ;;  %v2839_v30 = vadd.f32 %v4823_v49, %v2796_v44  ;;  %v3597_v62 = vpop.f32.mrb[14].mxu1  ;;  %v1569_v0 = vadd.f32 %v4823_v49, %v1521_v34 }
 0x215   : > { %v1598_v5 = vadd.f32 %v1597_v43, %v1583_v33  ;;  %v2799_v31 = vpop.f32.mrb[15].mxu1  ;;  %v2842_v46 = vadd.f32 %v3597_v62, %v4823_v49  ;;  %v2857_v56 = vmax.f32 %v2841_v3, 0.0  ;;  %v1587_v52 = vmax.f32 %v1571_v21, 0.0 }
 0x216   : > { %v2855_v10 = vmax.f32 %v2839_v30, 0.0  ;;  %v2869_v20 = vadd.f32 %v2868_v51, %v2854_v38  ;;  %v1585_v37 = vmax.f32 %v1569_v0, 0.0  ;;  %v2840_v4 = vadd.f32 %v4823_v49, %v2799_v31 }
 0x217   : > { %v1599_v57 = vadd.f32 %v1598_v5, %v1584_v55  ;;  %v2858_v23 = vmax.f32 %v2842_v46, 0.0 }
 0x218   : > { %v2870_v35 = vadd.f32 %v2869_v20, %v2855_v10  ;;  %v2856_v22 = vmax.f32 %v2840_v4, 0.0 }
 0x219   : > { %v1600_v29 = vadd.f32 %v1599_v57, %v1585_v37 }
 0x21a   : > { %v2871_v40 = vadd.f32 %v2870_v35, %v2856_v22 }
 0x21b   : > { %v1601_v17 = vadd.f32 %v1600_v29, %v1586_v28 }
 0x21c   : > { %v2872_v48 = vadd.f32 %v2871_v40, %v2857_v56 }
 0x21d   : > { %v1602_v26 = vadd.f32 %v1601_v17, %v1587_v52 }
 0x21e   : > { %v2873_v19 = vadd.f32 %v2872_v48, %v2858_v23 }
 0x21f   : > { %v1603_v27 = vrot.slane %v1602_v26, 4 }
 0x220   : > { %v2874_v53 = vrot.slane %v2873_v19, 4 }
 0x221   : > { %v1604_v50 = vadd.f32 %v1603_v27, %v1602_v26 }
 0x222   : > { %v2875_v11 = vadd.f32 %v2874_v53, %v2873_v19 }
 0x223   : > { %v1605_v45 = vrot.slane %v1604_v50, 2 }
 0x224   : > { %v2876_v6 = vrot.slane %v2875_v11, 2 }
 0x225   : > { %v1606_v49 = vadd.f32 %v1605_v45, %v1604_v50 }
 0x226   : > { %v2877_v36 = vadd.f32 %v2876_v6, %v2875_v11 }
 0x227   : > { %v1607_v58 = vrot.slane %v1606_v49, 1 }
 0x228   : > { %v2878_v16 = vrot.slane %v2877_v36, 1 }
 0x229   : > { %v1608_v1 = vadd.f32 %v1607_v58, %v1606_v49 }
 0x22a   : > { %v2879_v42 = vadd.f32 %v2878_v16, %v2877_v36 }
 0x22c   : > { %v2880_v41 = vadd.f32 %v2879_v42, %v1608_v1 }
 0x22e   : > { %v2881_v60 = vmul.f32 0.00390625, %v2880_v41 }
 0x230   : > { %2882 = vst [vmem:[%s162_s6] sm:$0x1] %v2881_v60 }
 0x231   : > { %3908 = shalt.err (!%p3905_p3)
}
 0x232   : > { %s3909_s24 = scalar_lea.hbm %s4862_s10, 16  ;;  %s3913_s27 = scalar_lea.hbm %s4907_s3, 32 }
 0x233   : > { %p3910_p4 = scmp.ne.s32.totalorder %s4862_s10, %s3909_s24  ;;  %p3914_p9 = scmp.lt.u32.totalorder %s4862_s10, %s4907_s3 }
 0x234   : > { %p3915_p10 = scmp.lt.u32.totalorder %s3913_s27, %s3909_s24  ;;  %p3917_p12 = scmp.lt.u32.totalorder %s3909_s24, %s4862_s10 }
 0x235   : > { %p3911_p7 = pnand %p3910_p4, %p4019_p5 }
 0x236   : > { %p3916_p11 = por %p3915_p10, %p3914_p9 }
 0x237   : > { %p3912_p8 = pneg %p3911_p7 }
 0x238   : > { %p3918_p13 = por %p3917_p12, %p3916_p11 }
 0x23a   : > { %p3919_p0 = pnand %p3918_p13, %p3912_p8 }
 0x23c   : > { %3922 = shalt.err (!%p3919_p0)
}
 0x23d   : > { %3855 = dma.vmem_to_hbm [thread:$0]  (%p4019_p5), %s4864_s7, 16, %s4862_s10, %s2884_s11  }
 0x23e PF: > { %p3861_p1 = scmp.ge.s32.totalorder %s3957_s15, 2  ;;  %s2908_s30 = sand.u32 1, %s3945_s12  }
 0x23f   : > { %s2909_s4 = scalar_lea.sflag [#allocation3], %s2908_s30 }
 0x240   : > { %p3858_p2 = pnand %p3861_p1, %p4023_p6 }
 0x242   : > { %3940 = dma.done.wait (!%p3858_p2), %s2909_s4, 16  }
 0x243   : > { %3942 = vsyncadd (!%p3858_p2), %s2909_s4, 4294967280  ;;  %p13_p3 = scmp.ge.s32.totalorder %s4006_s18, 4   ;;  %s4973_s12 = smov %s3949_s13 }
 0x244   : > { %s4974_s13 = smov %s3953_s14  ;;  %s4975_s14 = smov %s4017_s21 }
 0x245   : > { %s4976_s15 = smov %s4006_s18  ;;  %15 = sbr.rel (!%p13_p3) target bundleno = 3 (0x3), region = 75 }
 0x24c   :  { %2913 = vsyncpa [#allocation3], 1 }
 0x24d   :  { %2915 = vsyncpa [#allocation3 + $0x1], 1 }

</bundles_post_ra>
